<compile_context>
chip_gen: v7x
topology: tpu7x:2x2x1
jax: 0.10.0
libtpu: 0.0.40
codegen_flags: <defaults>
</compile_context>

<pallas_src>
import functools

import jax
import jax.numpy as jnp
from jax.experimental import pallas as pl
from jax.experimental.pallas import tpu as pltpu


def _global_attention_kernel(q_ref, ctx_ref, wc_ref, wq_ref,
                             attn_h_ref, align_ref,
                             *, s_valid, approx):
    q = q_ref[...]        # (Bt, Tt, Dp)   f32 or bf16
    ctx = ctx_ref[...]    # (Bt, Sp, Dp)   f32 or bf16
    Bt, Tt, Dp = q.shape
    Sp = ctx.shape[1]

    # score(h_t, h_s) = h_t . h_s  ('dot'): contract last dims, batch over B.
    # Contracting the rhs minor dim lowers to an MXU matmul with transposed rhs
    # (no explicit XLU transpose of the resident context is materialized).
    # TODO(synk): confirm with pl.lower_as_mlir that no per-step relayout of the
    #             resident context is emitted; if it is, pass a pre-transposed
    #             ctx_T from the wrapper (or transpose once into scratch).
    scores = jnp.einsum('bqd,bkd->bqk', q, ctx,
                        preferred_element_type=jnp.float32)      # (Bt, Tt, Sp) f32

    # Mask padded source columns before the softmax (static decision).
    if s_valid != Sp:
        col = jax.lax.broadcasted_iota(jnp.int32, scores.shape, 2)
        scores = jnp.where(col < s_valid, scores, jnp.float32(-1e30))

    # Numerically stable softmax over src_len (all in f32).
    # TODO(synk): on v6e/v7x an EUP-bound profile can use bf16 exp here; keep
    #             f32 on v5e (no bf16 EUP).
    m = jnp.max(scores, axis=-1, keepdims=True)
    p = jnp.exp(scores - m)
    denom = jnp.sum(p, axis=-1, keepdims=True)
    attn = p * pl.reciprocal(denom, approx=approx)               # (Bt, Tt, Sp) f32

    # Context vector c = attn @ context (batched, contract over src_len).
    c = jnp.einsum('bqk,bkd->bqd', attn.astype(ctx.dtype), ctx,
                   preferred_element_type=jnp.float32)           # (Bt, Tt, Dp) f32

    # linear_out([c, q]) == c @ W_c + q @ W_q, then tanh.  One big 2-D matmul
    # over the merged (Bt*Tt) rows keeps the MXU full.  Inputs are cast to the
    # weight dtype so the bf16 fast path also covers the output projection.
    mm_dtype = wc_ref.dtype
    c2 = c.astype(mm_dtype).reshape(Bt * Tt, Dp)
    q2 = q.astype(mm_dtype).reshape(Bt * Tt, Dp)
    h = (jnp.dot(c2, wc_ref[...], preferred_element_type=jnp.float32)
         + jnp.dot(q2, wq_ref[...], preferred_element_type=jnp.float32))
    attn_h = jnp.tanh(h)                                          # (Bt*Tt, Dp) f32

    # Dense, lane+sublane-aligned whole-block stores (compute layout).
    attn_h_ref[...] = attn_h.reshape(Bt, Tt, Dp).astype(attn_h_ref.dtype)
    align_ref[...] = attn.astype(align_ref.dtype)


def _round_up(x, m):
    return ((x + m - 1) // m) * m


def _vmem_hard_cap_bytes():
    """Physical-VMEM-aware cap for vmem_limit_bytes (v7x has 64 MiB/TC)."""
    cap = 128 * 1024 * 1024
    try:
        info = pltpu.get_tpu_info()
        cap = int(getattr(info, "vmem_capacity_bytes", cap))
    except Exception:
        pass
    if cap <= 64 * 1024 * 1024:                      # v7x-class part
        return min(cap - 8 * 1024 * 1024, 56 * 1024 * 1024)
    return min(cap - 16 * 1024 * 1024, 100 * 1024 * 1024)   # v5e / v6e


def global_attention(query, context, w_out, *,
                     t_tile=None, b_tile=None,
                     approx_softmax=True,
                     matmul_dtype=jnp.bfloat16,
                     align_dtype=jnp.float32):
    """
    query:   [batch, tgt_len, dim]  float32
    context: [batch, src_len, dim]  float32
    w_out:   [2*dim, dim]           float32 (pre-transposed nn.Linear(2*dim, dim) weight)
    matmul_dtype: dtype fed to the MXU (bfloat16 recommended on v5e/v6e/v7x;
                  None for exact f32).  Softmax math is always f32.
    align_dtype:  dtype of the returned attention weights (bfloat16 halves the
                  largest per-step store if the consumer tolerates it).
    returns (attn_h [tgt_len, batch, dim], align [tgt_len, batch, src_len])
    """
    B, T, D = query.shape
    Bc, S, Dc = context.shape
    assert B == Bc and D == Dc and w_out.shape == (2 * D, D)

    in_bytes = 4 if matmul_dtype is None else jnp.dtype(matmul_dtype).itemsize
    align_bytes = jnp.dtype(align_dtype).itemsize

    # Lane/sublane-friendly padding.
    D_pad = _round_up(D, 128)
    S_pad = _round_up(S, 128)
    T_ceil = _round_up(T, 8)

    hard_cap = _vmem_hard_cap_bytes()
    tile_budget = hard_cap - 4 * 1024 * 1024

    # VMEM cost model (conservative: 2 buffers everywhere, even though the
    # grid-invariant inputs request a single buffer).
    def fixed_cost(bt):
        return (2 * bt * S_pad * D_pad * in_bytes        # resident context
                + 2 * 2 * D_pad * D_pad * in_bytes)      # resident W_c / W_q

    def per_row_cost(bt):
        return (2 * bt * D_pad * in_bytes                # query tile (x2 buffers)
                + 2 * bt * D_pad * 4                     # attn_h out tile (x2)
                + 2 * bt * S_pad * align_bytes           # align out tile (x2)
                + 3 * bt * S_pad * 4                     # scores / p / attn temps
                + 3 * bt * D_pad * 4)                    # c / h / attn_h temps

    # Batch tiling: shrink B_tile until the resident context fits ~1/3 budget.
    B_tile = B if b_tile is None else max(1, min(int(b_tile), B))
    while B_tile > 1 and fixed_cost(B_tile) > tile_budget // 3:
        B_tile = (B_tile + 1) // 2
    B_pad = _round_up(B, B_tile)
    n_b = B_pad // B_tile

    # T tiling: largest multiple of 8 that fits the remaining budget.
    t_cap = min(T_ceil, 1024) if t_tile is None else min(_round_up(int(t_tile), 8), T_ceil)
    avail = max(tile_budget - fixed_cost(B_tile), per_row_cost(B_tile) * 8)
    T_tile = max(8, min(t_cap, (avail // per_row_cost(B_tile)) // 8 * 8))
    T_pad = _round_up(T, T_tile)
    n_t = T_pad // T_tile

    est = fixed_cost(B_tile) + per_row_cost(B_tile) * T_tile
    vmem_limit = int(min(max(est, 32 * 1024 * 1024), hard_cap))

    # Split linear_out into the halves acting on c and on q; both stay resident.
    w_dtype = jnp.float32 if matmul_dtype is None else matmul_dtype
    w_c = w_out[:D, :].astype(w_dtype)
    w_q = w_out[D:, :].astype(w_dtype)
    if D_pad != D:
        w_c = jnp.pad(w_c, ((0, D_pad - D), (0, D_pad - D)))
        w_q = jnp.pad(w_q, ((0, D_pad - D), (0, D_pad - D)))

    q_p = query
    if (B_pad != B) or (T_pad != T) or (D_pad != D):
        q_p = jnp.pad(query, ((0, B_pad - B), (0, T_pad - T), (0, D_pad - D)))
    ctx_p = context
    if (B_pad != B) or (S_pad != S) or (D_pad != D):
        ctx_p = jnp.pad(context, ((0, B_pad - B), (0, S_pad - S), (0, D_pad - D)))
    if matmul_dtype is not None:
        q_p = q_p.astype(matmul_dtype)
        ctx_p = ctx_p.astype(matmul_dtype)

    kernel = functools.partial(_global_attention_kernel,
                               s_valid=S, approx=approx_softmax)

    def _build_call(use_single_buffer):
        def _inv_spec(shape, index_map):
            # Grid-invariant (over T) inputs: single VMEM buffer.
            if use_single_buffer:
                return pl.BlockSpec(shape, index_map, pipeline_mode=pl.Buffered(1))
            return pl.BlockSpec(shape, index_map)

        return pl.pallas_call(
            kernel,
            out_shape=(
                jax.ShapeDtypeStruct((B_pad, T_pad, D_pad), jnp.float32),
                jax.ShapeDtypeStruct((B_pad, T_pad, S_pad), align_dtype),
            ),
            grid_spec=pltpu.PrefetchScalarGridSpec(
                num_scalar_prefetch=0,
                grid=(n_b, n_t),                                     # batch outer, T inner
                in_specs=[
                    pl.BlockSpec((B_tile, T_tile, D_pad), lambda b, t: (b, t, 0)),  # query tile
                    _inv_spec((B_tile, S_pad, D_pad), lambda b, t: (b, 0, 0)),      # context
                    _inv_spec((D_pad, D_pad), lambda b, t: (0, 0)),                 # W_c
                    _inv_spec((D_pad, D_pad), lambda b, t: (0, 0)),                 # W_q
                ],
                out_specs=[
                    pl.BlockSpec((B_tile, T_tile, D_pad), lambda b, t: (b, t, 0)),  # attn_h
                    pl.BlockSpec((B_tile, T_tile, S_pad), lambda b, t: (b, t, 0)),  # align
                ],
            ),
            compiler_params=pltpu.CompilerParams(
                # TODO(synk): on v7x, mark one axis pltpu.CORE_PARALLEL (and
                #             confirm in the trace) to shard across the 2 TCs.
                dimension_semantics=("parallel", "arbitrary"),
                vmem_limit_bytes=vmem_limit,
            ),
        )

    try:
        attn_h_p, align_p = _build_call(True)(q_p, ctx_p, w_c, w_q)
        jax.block_until_ready((attn_h_p, align_p))
    except Exception:
        # Installed JAX may reject Buffered(1): fall back to default pipelining
        # (correct, just uses one extra copy of the invariant inputs in VMEM).
        attn_h_p, align_p = _build_call(False)(q_p, ctx_p, w_c, w_q)

    # Outputs are produced in compute layout (B, T, ...); one cheap transpose in
    # the wrapper yields the PyTorch return layout [tgt_len, batch, ...].
    attn_h = jnp.transpose(attn_h_p[:B, :T, :D], (1, 0, 2))
    align = jnp.transpose(align_p[:B, :T, :S], (1, 0, 2))
    return attn_h, align


# TODO(synk): coverage, affective attention (norm/matrix_norm/bigram_norm),
#             context_lengths masking, the 'general'/'mlp' score functions and
#             the one-step (2-D query) squeeze path are outside the default
#             ('dot', coverage=False, 3-D query) path and are not implemented.
# TODO(synk): for very long src_len, switch to an online (flash-style) softmax
#             over S tiles instead of the fully-resident context.


def _reference(query, context, w_out):
    # Pure-JAX f32 reference mirroring the PyTorch forward ('dot' attention).
    scores = jnp.einsum('btd,bsd->bts', query, context)
    attn = jax.nn.softmax(scores, axis=-1)
    c = jnp.einsum('bts,bsd->btd', attn, context)
    concat = jnp.concatenate([c, query], axis=-1)
    attn_h = jnp.tanh(concat @ w_out)
    return jnp.transpose(attn_h, (1, 0, 2)), jnp.transpose(attn, (1, 0, 2))


if __name__ == "__main__":
    def run_case(key, B, T, S, D, *, matmul_dtype, approx, atol, rtol):
        kq, kc, kw = jax.random.split(key, 3)
        q = jax.random.normal(kq, (B, T, D), dtype=jnp.float32)
        c = jax.random.normal(kc, (B, S, D), dtype=jnp.float32)
        w = jax.random.normal(kw, (2 * D, D), dtype=jnp.float32) * (1.0 / jnp.sqrt(2.0 * D))

        attn_h, align = global_attention(q, c, w,
                                         matmul_dtype=matmul_dtype,
                                         approx_softmax=approx)
        jax.block_until_ready((attn_h, align))

        ref_h, ref_a = _reference(q, c, w)
        assert attn_h.shape == (T, B, D)
        assert align.shape == (T, B, S)
        assert jnp.allclose(attn_h, ref_h, atol=atol, rtol=rtol)
        assert jnp.allclose(align.astype(jnp.float32), ref_a, atol=atol, rtol=rtol)

    root = jax.random.PRNGKey(0)
    k1, k2, k3 = jax.random.split(root, 3)

    # Exact f32 path (strict check against the f32 reference).
    run_case(k1, B=2, T=8, S=8, D=32, matmul_dtype=None, approx=False,
             atol=1e-5, rtol=1e-5)
    # Recommended fast path: bf16 MXU inputs + EUP approximate reciprocal.
    run_case(k2, B=2, T=8, S=8, D=32, matmul_dtype=jnp.bfloat16, approx=True,
             atol=1e-1, rtol=5e-2)
    # Ragged T/S exercising the padding + source-column masking path.
    run_case(k3, B=2, T=5, S=11, D=32, matmul_dtype=None, approx=False,
             atol=1e-5, rtol=1e-5)

    print("KERNEL_OK")
</pallas_src>

<mosaic_0001>
module attributes {stable_mosaic.version = 11 : i64} {
  func.func @_global_attention_kernel(%arg0: i32, %arg1: i32, %arg2: memref<2x8x128xf32, #tpu.memory_space<vmem>>, %arg3: memref<2x128x128xf32, #tpu.memory_space<vmem>>, %arg4: memref<128x128xf32, #tpu.memory_space<vmem>>, %arg5: memref<128x128xf32, #tpu.memory_space<vmem>>, %arg6: memref<2x8x128xf32, #tpu.memory_space<vmem>>, %arg7: memref<2x8x128xf32, #tpu.memory_space<vmem>>) attributes {dimension_semantics = [#tpu.dimension_semantics<parallel>, #tpu.dimension_semantics<arbitrary>], iteration_bounds = array<i64: 1, 1>, scalar_prefetch = 0 : i64, scratch_operands = 0 : i64, tpu.core_type = #tpu.core_type<tc>, window_params = [{transform_indices = @transform_0, window_bounds = array<i64: 2, 8, 128>}, {pipeline_mode = #tpu.pipeline_mode<synchronous>, transform_indices = @transform_1, window_bounds = array<i64: 2, 128, 128>}, {pipeline_mode = #tpu.pipeline_mode<synchronous>, transform_indices = @transform_2, window_bounds = array<i64: 128, 128>}, {pipeline_mode = #tpu.pipeline_mode<synchronous>, transform_indices = @transform_3, window_bounds = array<i64: 128, 128>}, {transform_indices = @transform_4, window_bounds = array<i64: 2, 8, 128>}, {transform_indices = @transform_5, window_bounds = array<i64: 2, 8, 128>}]} {
    %c0 = arith.constant 0 : index
    %c0_0 = arith.constant 0 : index
    %c0_1 = arith.constant 0 : index
    %0 = vector.load %arg2[%c0, %c0_0, %c0_1] : memref<2x8x128xf32, #tpu.memory_space<vmem>>, vector<2x8x128xf32>
    %c0_2 = arith.constant 0 : index
    %c0_3 = arith.constant 0 : index
    %c0_4 = arith.constant 0 : index
    %1 = vector.load %arg3[%c0_2, %c0_3, %c0_4] : memref<2x128x128xf32, #tpu.memory_space<vmem>>, vector<2x128x128xf32>
    "tpu.trace_start"() <{level = 10 : i32, message = "bqd,bkd->bqk"}> : () -> ()
    %cst = arith.constant dense<0.000000e+00> : vector<2x8x128xf32>
    %2 = tpu.matmul %0, %1, %cst {dimension_numbers = #tpu.dot_dimension_numbers<[2], [2], [1], [1], [0, 0, 0, 1, 1, 1], [0], [0]>} : vector<2x8x128xf32>, vector<2x128x128xf32>, vector<2x8x128xf32> -> vector<2x8x128xf32>
    "tpu.trace_stop"() : () -> ()
    %3 = tpu.iota {dimensions = array<i32: 2>} : vector<2x8x128xi32>
    %c8_i32 = arith.constant 8 : i32
    %4 = vector.broadcast %c8_i32 : i32 to vector<2x8x128xi32>
    %5 = arith.cmpi slt, %3, %4 : vector<2x8x128xi32>
    %cst_5 = arith.constant -1.000000e+30 : f32
    %6 = vector.broadcast %cst_5 : f32 to vector<2x8x128xf32>
    %7 = arith.select %5, %2, %6 : vector<2x8x128xi1>, vector<2x8x128xf32>
    %cst_6 = arith.constant dense<0xFF800000> : vector<2x8xf32>
    %8 = vector.multi_reduction <maximumf>, %7, %cst_6 [2] : vector<2x8x128xf32> to vector<2x8xf32>
    %9 = vector.shape_cast %8 : vector<2x8xf32> to vector<2x8x1xf32>
    %10 = vector.broadcast %9 : vector<2x8x1xf32> to vector<2x8x128xf32>
    %11 = arith.subf %7, %10 : vector<2x8x128xf32>
    %12 = math.exp %11 : vector<2x8x128xf32>
    %cst_7 = arith.constant dense<0.000000e+00> : vector<2x8xf32>
    %13 = vector.multi_reduction <add>, %12, %cst_7 [2] : vector<2x8x128xf32> to vector<2x8xf32>
    %14 = vector.shape_cast %13 : vector<2x8xf32> to vector<2x8x1xf32>
    %15 = tpu.reciprocal %14 : vector<2x8x1xf32> -> vector<2x8x1xf32>
    %16 = vector.broadcast %15 : vector<2x8x1xf32> to vector<2x8x128xf32>
    %17 = arith.mulf %12, %16 : vector<2x8x128xf32>
    "tpu.trace_start"() <{level = 10 : i32, message = "bqk,bkd->bqd"}> : () -> ()
    %cst_8 = arith.constant dense<0.000000e+00> : vector<2x8x128xf32>
    %18 = tpu.matmul %17, %1, %cst_8 {dimension_numbers = #tpu.dot_dimension_numbers<[2], [1], [1], [2], [0, 0, 0, 1, 1, 2], [0], [0]>} : vector<2x8x128xf32>, vector<2x128x128xf32>, vector<2x8x128xf32> -> vector<2x8x128xf32>
    "tpu.trace_stop"() : () -> ()
    %19 = vector.shape_cast %18 : vector<2x8x128xf32> to vector<16x128xf32>
    %20 = vector.shape_cast %0 : vector<2x8x128xf32> to vector<16x128xf32>
    %c0_9 = arith.constant 0 : index
    %c0_10 = arith.constant 0 : index
    %21 = vector.load %arg4[%c0_9, %c0_10] : memref<128x128xf32, #tpu.memory_space<vmem>>, vector<128x128xf32>
    %cst_11 = arith.constant dense<0.000000e+00> : vector<16x128xf32>
    %22 = tpu.matmul %19, %21, %cst_11 {dimension_numbers = #tpu.dot_dimension_numbers<[1], [0], [0], [1], [0, 0, 1, 1], [], []>} : vector<16x128xf32>, vector<128x128xf32>, vector<16x128xf32> -> vector<16x128xf32>
    %c0_12 = arith.constant 0 : index
    %c0_13 = arith.constant 0 : index
    %23 = vector.load %arg5[%c0_12, %c0_13] : memref<128x128xf32, #tpu.memory_space<vmem>>, vector<128x128xf32>
    %cst_14 = arith.constant dense<0.000000e+00> : vector<16x128xf32>
    %24 = tpu.matmul %20, %23, %cst_14 {dimension_numbers = #tpu.dot_dimension_numbers<[1], [0], [0], [1], [0, 0, 1, 1], [], []>} : vector<16x128xf32>, vector<128x128xf32>, vector<16x128xf32> -> vector<16x128xf32>
    %25 = arith.addf %22, %24 : vector<16x128xf32>
    %26 = math.tanh %25 : vector<16x128xf32>
    %27 = vector.shape_cast %26 : vector<16x128xf32> to vector<2x8x128xf32>
    %c0_15 = arith.constant 0 : index
    %c0_16 = arith.constant 0 : index
    %c0_17 = arith.constant 0 : index
    %28 = vector.load %arg6[%c0_15, %c0_16, %c0_17] : memref<2x8x128xf32, #tpu.memory_space<vmem>>, vector<2x8x128xf32>
    tpu.vector_store %arg6[%c0_15, %c0_16, %c0_17], %27 {strides = array<i32>} : memref<2x8x128xf32, #tpu.memory_space<vmem>>, vector<2x8x128xf32>,
    %c0_18 = arith.constant 0 : index
    %c0_19 = arith.constant 0 : index
    %c0_20 = arith.constant 0 : index
    %29 = vector.load %arg7[%c0_18, %c0_19, %c0_20] : memref<2x8x128xf32, #tpu.memory_space<vmem>>, vector<2x8x128xf32>
    tpu.vector_store %arg7[%c0_18, %c0_19, %c0_20], %17 {strides = array<i32>} : memref<2x8x128xf32, #tpu.memory_space<vmem>>, vector<2x8x128xf32>,
    return
  }
  func.func @transform_0(%arg0: i32, %arg1: i32) -> (i32, i32, i32) {
    %c0_i32 = arith.constant 0 : i32
    %c0_i32_0 = arith.constant 0 : i32
    return %arg0, %arg1, %c0_i32 : i32, i32, i32
  }
  func.func @transform_1(%arg0: i32, %arg1: i32) -> (i32, i32, i32) {
    %c0_i32 = arith.constant 0 : i32
    %c0_i32_0 = arith.constant 0 : i32
    %c0_i32_1 = arith.constant 0 : i32
    return %arg0, %c0_i32, %c0_i32_0 : i32, i32, i32
  }
  func.func @transform_2(%arg0: i32, %arg1: i32) -> (i32, i32) {
    %c0_i32 = arith.constant 0 : i32
    %c0_i32_0 = arith.constant 0 : i32
    %c0_i32_1 = arith.constant 0 : i32
    return %c0_i32, %c0_i32_0 : i32, i32
  }
  func.func @transform_3(%arg0: i32, %arg1: i32) -> (i32, i32) {
    %c0_i32 = arith.constant 0 : i32
    %c0_i32_0 = arith.constant 0 : i32
    %c0_i32_1 = arith.constant 0 : i32
    return %c0_i32, %c0_i32_0 : i32, i32
  }
  func.func @transform_4(%arg0: i32, %arg1: i32) -> (i32, i32, i32) {
    %c0_i32 = arith.constant 0 : i32
    %c0_i32_0 = arith.constant 0 : i32
    return %arg0, %arg1, %c0_i32 : i32, i32, i32
  }
  func.func @transform_5(%arg0: i32, %arg1: i32) -> (i32, i32, i32) {
    %c0_i32 = arith.constant 0 : i32
    %c0_i32_0 = arith.constant 0 : i32
    return %arg0, %arg1, %c0_i32 : i32, i32, i32
  }
}

module attributes {stable_mosaic.version = 11 : i64} {
  func.func @_global_attention_kernel(%arg0: i32, %arg1: i32, %arg2: memref<2x8x128xf32, #tpu.memory_space<vmem>>, %arg3: memref<2x128x128xf32, #tpu.memory_space<vmem>>, %arg4: memref<128x128xf32, #tpu.memory_space<vmem>>, %arg5: memref<128x128xf32, #tpu.memory_space<vmem>>, %arg6: memref<2x8x128xf32, #tpu.memory_space<vmem>>, %arg7: memref<2x8x128xf32, #tpu.memory_space<vmem>>) attributes {dimension_semantics = [#tpu.dimension_semantics<parallel>, #tpu.dimension_semantics<arbitrary>], iteration_bounds = array<i64: 1, 1>, scalar_prefetch = 0 : i64, scratch_operands = 0 : i64, tpu.core_type = #tpu.core_type<tc>, window_params = [{transform_indices = @transform_0, window_bounds = array<i64: 2, 8, 128>}, {transform_indices = @transform_1, window_bounds = array<i64: 2, 128, 128>}, {pipeline_mode = #tpu.pipeline_mode<synchronous>, transform_indices = @transform_2, window_bounds = array<i64: 128, 128>}, {pipeline_mode = #tpu.pipeline_mode<synchronous>, transform_indices = @transform_3, window_bounds = array<i64: 128, 128>}, {transform_indices = @transform_4, window_bounds = array<i64: 2, 8, 128>}, {transform_indices = @transform_5, window_bounds = array<i64: 2, 8, 128>}]} {
    %c0 = arith.constant 0 : index
    %c0_0 = arith.constant 0 : index
    %c0_1 = arith.constant 0 : index
    %0 = vector.load %arg2[%c0, %c0_0, %c0_1] : memref<2x8x128xf32, #tpu.memory_space<vmem>>, vector<2x8x128xf32>
    %c0_2 = arith.constant 0 : index
    %c0_3 = arith.constant 0 : index
    %c0_4 = arith.constant 0 : index
    %1 = vector.load %arg3[%c0_2, %c0_3, %c0_4] : memref<2x128x128xf32, #tpu.memory_space<vmem>>, vector<2x128x128xf32>
    "tpu.trace_start"() <{level = 10 : i32, message = "bqd,bkd->bqk"}> : () -> ()
    %cst = arith.constant dense<0.000000e+00> : vector<2x8x128xf32>
    %2 = tpu.matmul %0, %1, %cst {dimension_numbers = #tpu.dot_dimension_numbers<[2], [2], [1], [1], [0, 0, 0, 1, 1, 1], [0], [0]>} : vector<2x8x128xf32>, vector<2x128x128xf32>, vector<2x8x128xf32> -> vector<2x8x128xf32>
    "tpu.trace_stop"() : () -> ()
    %3 = tpu.iota {dimensions = array<i32: 2>} : vector<2x8x128xi32>
    %c8_i32 = arith.constant 8 : i32
    %4 = vector.broadcast %c8_i32 : i32 to vector<2x8x128xi32>
    %5 = arith.cmpi slt, %3, %4 : vector<2x8x128xi32>
    %cst_5 = arith.constant -1.000000e+30 : f32
    %6 = vector.broadcast %cst_5 : f32 to vector<2x8x128xf32>
    %7 = arith.select %5, %2, %6 : vector<2x8x128xi1>, vector<2x8x128xf32>
    %cst_6 = arith.constant dense<0xFF800000> : vector<2x8xf32>
    %8 = vector.multi_reduction <maximumf>, %7, %cst_6 [2] : vector<2x8x128xf32> to vector<2x8xf32>
    %9 = vector.shape_cast %8 : vector<2x8xf32> to vector<2x8x1xf32>
    %10 = vector.broadcast %9 : vector<2x8x1xf32> to vector<2x8x128xf32>
    %11 = arith.subf %7, %10 : vector<2x8x128xf32>
    %12 = math.exp %11 : vector<2x8x128xf32>
    %cst_7 = arith.constant dense<0.000000e+00> : vector<2x8xf32>
    %13 = vector.multi_reduction <add>, %12, %cst_7 [2] : vector<2x8x128xf32> to vector<2x8xf32>
    %14 = vector.shape_cast %13 : vector<2x8xf32> to vector<2x8x1xf32>
    %15 = tpu.reciprocal %14 : vector<2x8x1xf32> -> vector<2x8x1xf32>
    %16 = vector.broadcast %15 : vector<2x8x1xf32> to vector<2x8x128xf32>
    %17 = arith.mulf %12, %16 : vector<2x8x128xf32>
    "tpu.trace_start"() <{level = 10 : i32, message = "bqk,bkd->bqd"}> : () -> ()
    %cst_8 = arith.constant dense<0.000000e+00> : vector<2x8x128xf32>
    %18 = tpu.matmul %17, %1, %cst_8 {dimension_numbers = #tpu.dot_dimension_numbers<[2], [1], [1], [2], [0, 0, 0, 1, 1, 2], [0], [0]>} : vector<2x8x128xf32>, vector<2x128x128xf32>, vector<2x8x128xf32> -> vector<2x8x128xf32>
    "tpu.trace_stop"() : () -> ()
    %19 = vector.shape_cast %18 : vector<2x8x128xf32> to vector<16x128xf32>
    %20 = vector.shape_cast %0 : vector<2x8x128xf32> to vector<16x128xf32>
    %c0_9 = arith.constant 0 : index
    %c0_10 = arith.constant 0 : index
    %21 = vector.load %arg4[%c0_9, %c0_10] : memref<128x128xf32, #tpu.memory_space<vmem>>, vector<128x128xf32>
    %cst_11 = arith.constant dense<0.000000e+00> : vector<16x128xf32>
    %22 = tpu.matmul %19, %21, %cst_11 {dimension_numbers = #tpu.dot_dimension_numbers<[1], [0], [0], [1], [0, 0, 1, 1], [], []>} : vector<16x128xf32>, vector<128x128xf32>, vector<16x128xf32> -> vector<16x128xf32>
    %c0_12 = arith.constant 0 : index
    %c0_13 = arith.constant 0 : index
    %23 = vector.load %arg5[%c0_12, %c0_13] : memref<128x128xf32, #tpu.memory_space<vmem>>, vector<128x128xf32>
    %cst_14 = arith.constant dense<0.000000e+00> : vector<16x128xf32>
    %24 = tpu.matmul %20, %23, %cst_14 {dimension_numbers = #tpu.dot_dimension_numbers<[1], [0], [0], [1], [0, 0, 1, 1], [], []>} : vector<16x128xf32>, vector<128x128xf32>, vector<16x128xf32> -> vector<16x128xf32>
    %25 = arith.addf %22, %24 : vector<16x128xf32>
    %26 = math.tanh %25 : vector<16x128xf32>
    %27 = vector.shape_cast %26 : vector<16x128xf32> to vector<2x8x128xf32>
    %c0_15 = arith.constant 0 : index
    %c0_16 = arith.constant 0 : index
    %c0_17 = arith.constant 0 : index
    %28 = vector.load %arg6[%c0_15, %c0_16, %c0_17] : memref<2x8x128xf32, #tpu.memory_space<vmem>>, vector<2x8x128xf32>
    tpu.vector_store %arg6[%c0_15, %c0_16, %c0_17], %27 {strides = array<i32>} : memref<2x8x128xf32, #tpu.memory_space<vmem>>, vector<2x8x128xf32>,
    %c0_18 = arith.constant 0 : index
    %c0_19 = arith.constant 0 : index
    %c0_20 = arith.constant 0 : index
    %29 = vector.load %arg7[%c0_18, %c0_19, %c0_20] : memref<2x8x128xf32, #tpu.memory_space<vmem>>, vector<2x8x128xf32>
    tpu.vector_store %arg7[%c0_18, %c0_19, %c0_20], %17 {strides = array<i32>} : memref<2x8x128xf32, #tpu.memory_space<vmem>>, vector<2x8x128xf32>,
    return
  }
  func.func @transform_0(%arg0: i32, %arg1: i32) -> (i32, i32, i32) {
    %c0_i32 = arith.constant 0 : i32
    %c0_i32_0 = arith.constant 0 : i32
    return %arg0, %arg1, %c0_i32 : i32, i32, i32
  }
  func.func @transform_1(%arg0: i32, %arg1: i32) -> (i32, i32, i32) {
    %c0_i32 = arith.constant 0 : i32
    %c0_i32_0 = arith.constant 0 : i32
    %c0_i32_1 = arith.constant 0 : i32
    return %arg0, %c0_i32, %c0_i32_0 : i32, i32, i32
  }
  func.func @transform_2(%arg0: i32, %arg1: i32) -> (i32, i32) {
    %c0_i32 = arith.constant 0 : i32
    %c0_i32_0 = arith.constant 0 : i32
    %c0_i32_1 = arith.constant 0 : i32
    return %c0_i32, %c0_i32_0 : i32, i32
  }
  func.func @transform_3(%arg0: i32, %arg1: i32) -> (i32, i32) {
    %c0_i32 = arith.constant 0 : i32
    %c0_i32_0 = arith.constant 0 : i32
    %c0_i32_1 = arith.constant 0 : i32
    return %c0_i32, %c0_i32_0 : i32, i32
  }
  func.func @transform_4(%arg0: i32, %arg1: i32) -> (i32, i32, i32) {
    %c0_i32 = arith.constant 0 : i32
    %c0_i32_0 = arith.constant 0 : i32
    return %arg0, %arg1, %c0_i32 : i32, i32, i32
  }
  func.func @transform_5(%arg0: i32, %arg1: i32) -> (i32, i32, i32) {
    %c0_i32 = arith.constant 0 : i32
    %c0_i32_0 = arith.constant 0 : i32
    return %arg0, %arg1, %c0_i32 : i32, i32, i32
  }
}

</mosaic_0001>

<bundles_post_ra>
// kernel: tpu_custom_call.1
= control target key start
LH: loop header
LB: loop body
LE: loop exit
PB: predicated region body
PF: predicated region fallthrough
CT: control target
= control target key end

     0   :  { %11 = vsyncpa [#allocation3], 0  ;;  %s1510_s0 = inlined_call_operand.hbm [shape: f32[2,8,128], index: 0, kind: input, shape index: {}]   ;;  %s1511_s1 = inlined_call_operand.hbm [shape: f32[2,128,128], index: 1, kind: input, shape index: {}]   ;;  %s1512_s2 = inlined_call_operand.hbm [shape: f32[128,128], index: 2, kind: input, shape index: {}]   ;;  %s1513_s3 = inlined_call_operand.hbm [shape: f32[128,128], index: 3, kind: input, shape index: {}]   ;;  %s1514_s4 = inlined_call_operand.hbm [shape: f32[2,8,128], index: 4, kind: output, shape index: {0}]   ;;  %s1515_s5 = inlined_call_operand.hbm [shape: f32[2,8,128], index: 5, kind: output, shape index: {1}]  }
   0x1   :  { %12 = vsyncpa [#allocation6], 0 }
   0x2   :  { %13 = vsyncpa [#allocation9], 0 }
   0x3   :  { %14 = vsyncpa [#allocation4], 0 }
   0x4   :  { %15 = vsyncpa [#allocation12], 0  ;;  %s1277_s18 = smov [#allocation5]   ;;  %s1278_s20 = smov [#allocation2]  }
   0x5   :  { %s33_s19 = sshll.u32 %s1277_s18, 4  ;;  %s21_s21 = sshll.u32 %s1278_s20, 4  ;;  %s34_s19 = int_to_ptr.vmem [resolvable:$true] %s33_s19  ;;  %s1318_s21 = int_to_ptr.vmem [resolvable:$true] %s21_s21 }
   0x6   :  { %s1135_s24 = scalar_lea.hbm %s1511_s1, 4096 }
   0x7   :  { %p1136_p0 = scmp.ne.s32.totalorder %s1511_s1, %s1135_s24  ;;  %p1139_p1 = scmp.lt.u32.totalorder %s1135_s24, %s1511_s1 }
   0x9   :  { %p1141_p2 = pnand %p1139_p1, %p1136_p0 }
   0xb   :  { %1144 = shalt.err (!%p1141_p2)
}
   0xc   :  { %s1145_s29 = scalar_lea.vmem %s34_s19, 4096  ;;  %p1150_p4 = scmp.lt.s32.totalorder %s34_s19, %s34_s19 }
   0xd   :  { %p1146_p3 = scmp.ne.s32.totalorder %s34_s19, %s1145_s29  ;;  %p1151_p5 = scmp.lt.s32.totalorder %s1145_s29, %s1145_s29 }
   0xf   :  { %p1152_p6 = por %p1151_p5, %p1150_p4 }
  0x11   :  { %p1153_p7 = pnand %p1152_p6, %p1146_p3 }
  0x13   :  { %1156 = shalt.err (!%p1153_p7)
}
  0x14   :  { %s1279_s30 = smov 128   ;;  %s1280_s6 = smov 8  }
  0x15   :  { %39 = dma.hbm_to_vmem [thread:$0]  %s1511_s1, 4096, %s34_s19, [#allocation6], %s1279_s30, %s1279_s30, %s1280_s6  }
  0x16   :  { %s1157_s11 = scalar_lea.hbm %s1510_s0, 256 }
  0x17   :  { %p1158_p8 = scmp.ne.s32.totalorder %s1510_s0, %s1157_s11  ;;  %p1161_p9 = scmp.lt.u32.totalorder %s1157_s11, %s1510_s0 }
  0x19   :  { %p1163_p10 = pnand %p1161_p9, %p1158_p8 }
  0x1b   :  { %1166 = shalt.err (!%p1163_p10)
}
  0x1c   :  { %s1167_s16 = scalar_lea.vmem %s1318_s21, 256  ;;  %p1172_p12 = scmp.lt.s32.totalorder %s1318_s21, %s1318_s21 }
  0x1d   :  { %p1168_p11 = scmp.ne.s32.totalorder %s1318_s21, %s1167_s16  ;;  %p1173_p13 = scmp.lt.s32.totalorder %s1167_s16, %s1167_s16 }
  0x1f   :  { %p1174_p0 = por %p1173_p13, %p1172_p12 }
  0x21   :  { %p1175_p1 = pnand %p1174_p0, %p1168_p11 }
  0x23   :  { %1178 = shalt.err (!%p1175_p1)
}
  0x24   :  { %27 = dma.hbm_to_vmem [thread:$0]  %s1510_s0, 256, %s1318_s21, [#allocation3], %s1279_s30, %s1279_s30, %s1280_s6  }
  0x25   :  { %s1281_s18 = smov [#allocation7]   ;;  %s1282_s20 = smov [#allocation8]  }
  0x26   :  { %s45_s19 = sshll.u32 %s1281_s18, 4  ;;  %s57_s22 = sshll.u32 %s1282_s20, 4  ;;  %s46_s19 = int_to_ptr.vmem [resolvable:$true] %s45_s19  ;;  %s1355_s22 = int_to_ptr.vmem [resolvable:$true] %s57_s22 }
  0x27   :  { %s1179_s25 = scalar_lea.hbm %s1512_s2, 2048 }
  0x28   :  { %p1180_p2 = scmp.ne.s32.totalorder %s1512_s2, %s1179_s25  ;;  %p1183_p3 = scmp.lt.u32.totalorder %s1179_s25, %s1512_s2 }
  0x2a   :  { %p1185_p4 = pnand %p1183_p3, %p1180_p2 }
  0x2c   :  { %1188 = shalt.err (!%p1185_p4)
}
  0x2d   :  { %s1189_s0 = scalar_lea.vmem %s46_s19, 2048  ;;  %p1194_p6 = scmp.lt.s32.totalorder %s46_s19, %s46_s19 }
  0x2e   :  { %p1190_p5 = scmp.ne.s32.totalorder %s46_s19, %s1189_s0  ;;  %p1195_p7 = scmp.lt.s32.totalorder %s1189_s0, %s1189_s0 }
  0x30   :  { %p1196_p8 = por %p1195_p7, %p1194_p6 }
  0x32   :  { %p1197_p9 = pnand %p1196_p8, %p1190_p5 }
  0x34   :  { %1200 = shalt.err (!%p1197_p9)
}
  0x35   :  { %51 = dma.hbm_to_vmem [thread:$0]  %s1512_s2, 2048, %s46_s19, [#allocation6], %s1279_s30, %s1279_s30, %s1280_s6  }
  0x36   :  { %s1201_s10 = scalar_lea.hbm %s1513_s3, 2048 }
  0x37   :  { %p1202_p10 = scmp.ne.s32.totalorder %s1513_s3, %s1201_s10  ;;  %p1205_p11 = scmp.lt.u32.totalorder %s1201_s10, %s1513_s3 }
  0x39   :  { %p1207_p12 = pnand %p1205_p11, %p1202_p10 }
  0x3b   :  { %1210 = shalt.err (!%p1207_p12)
}
  0x3c   :  { %s1211_s15 = scalar_lea.vmem %s1355_s22, 2048  ;;  %p1216_p0 = scmp.lt.s32.totalorder %s1355_s22, %s1355_s22 }
  0x3d   :  { %p1212_p13 = scmp.ne.s32.totalorder %s1355_s22, %s1211_s15  ;;  %p1217_p1 = scmp.lt.s32.totalorder %s1211_s15, %s1211_s15 }
  0x3f   :  { %p1218_p2 = por %p1217_p1, %p1216_p0 }
  0x41   :  { %p1219_p3 = pnand %p1218_p2, %p1212_p13 }
  0x43   :  { %1222 = shalt.err (!%p1219_p3)
}
  0x44   :  { %63 = dma.hbm_to_vmem [thread:$0]  %s1513_s3, 2048, %s1355_s22, [#allocation9], %s1279_s30, %s1279_s30, %s1280_s6  }
  0x45   :  { %1267 = dma.done.wait [#allocation3], 256  }
  0x46   :  { %1268 = vsyncadd [#allocation3], 4294967040 }
  0x47   :  { %1269 = dma.done.wait [#allocation6], 6144  }
  0x48   :  { %1270 = vsyncadd [#allocation6], 4294961152 }
  0x49   :  { %1271 = dma.done.wait [#allocation9], 2048  }
  0x4a   :  { %1272 = vsyncadd [#allocation9], 4294965248  ;;  %v1283_v0 = vmov 0.0|0.0   ;;  %vm1284_vm0 = vmmov 0   ;;  %v1285_v1 = vmov 0.0   ;;  %v78_v2 = vld [vmem:[#allocation5] sm:$0xff]  ;;  %v250_v52 = vlaneseq }
  0x4b   :  { %950 = vmatprep.subr.bf16.mxu0 %v1283_v0  ;;  %974 = vmatprep.subr.bf16.mxu1 %v1283_v0  ;;  %v79_v3 = vld [vmem:[#allocation5 + $0x8] sm:$0xff]  ;;  %v94_v4 = vld [vmem:[#allocation5 + $0x80] sm:$0xff]  ;;  %v80_v8 = vld [vmem:[#allocation5 + $0x10] sm:$0xff]  ;;  %s1286_s3 = smov [#allocation11]  }
  0x4c   :  { %772 = vmatprep.mubr.msk.f32.mxu0 %vm1284_vm0, %v1285_v1  ;;  %807 = vmatprep.mubr.msk.f32.mxu1 %vm1284_vm0, %v1285_v1  ;;  %v1398_v5 = vpack.c.bf16 %v79_v3, %v78_v2  ;;  %v95_v6 = vld [vmem:[#allocation5 + $0x88] sm:$0xff]  ;;  %v81_v9 = vld [vmem:[#allocation5 + $0x18] sm:$0xff]  ;;  %v96_v10 = vld [vmem:[#allocation5 + $0x90] sm:$0xff]  ;;  %v251_v53 = vand.u32 127, %v250_v52  ;;  %s618_s1 = sshll.u32 %s1286_s3, 4  ;;  %s619_s1 = int_to_ptr.vmem [resolvable:$true] %s618_s1 }
  0x4d   :  { %v1400_v7 = vpack.c.bf16 %v95_v6, %v94_v4  ;;  %v97_v11 = vld [vmem:[#allocation5 + $0x98] sm:$0xff]  ;;  %v1406_v12 = vpack.c.bf16 %v81_v9, %v80_v8  ;;  %v82_v14 = vld [vmem:[#allocation5 + $0x20] sm:$0xff]  ;;  %v83_v15 = vld [vmem:[#allocation5 + $0x28] sm:$0xff]  ;;  %s1223_s17 = scalar_lea.vmem %s619_s1, 256  ;;  %p1228_p5 = scmp.lt.s32.totalorder %s619_s1, %s619_s1 }
  0x4e   :  { %952 = vmatpush3.bf16.xpose.msra.mxu0 %v1398_v5  ;;  %v1408_v13 = vpack.c.bf16 %v97_v11, %v96_v10  ;;  %v98_v16 = vld [vmem:[#allocation5 + $0xa0] sm:$0xff]  ;;  %v99_v17 = vld [vmem:[#allocation5 + $0xa8] sm:$0xff]  ;;  %v1414_v18 = vpack.c.bf16 %v83_v15, %v82_v14  ;;  %v84_v20 = vld [vmem:[#allocation5 + $0x30] sm:$0xff]  ;;  %vm252_vm1 = vcmp.lt.s32.totalorder %v251_v53, 8  ;;  %p1224_p4 = scmp.ne.s32.totalorder %s619_s1, %s1223_s17  ;;  %p1229_p6 = scmp.lt.s32.totalorder %s1223_s17, %s1223_s17 }
  0x4f   :  { %976 = vmatpush3.bf16.xpose.msra.mxu1 %v1400_v7  ;;  %953 = vmatprep.subr.bf16.mxu0 %v1283_v0  ;;  %v1416_v19 = vpack.c.bf16 %v99_v17, %v98_v16  ;;  %v85_v21 = vld [vmem:[#allocation5 + $0x38] sm:$0xff]  ;;  %v100_v22 = vld [vmem:[#allocation5 + $0xb0] sm:$0xff]  ;;  %v86_v26 = vld [vmem:[#allocation5 + $0x40] sm:$0xff] }
  0x50   :  { %977 = vmatprep.subr.bf16.mxu1 %v1283_v0  ;;  %v101_v23 = vld [vmem:[#allocation5 + $0xb8] sm:$0xff]  ;;  %v960_v24 = vpack.c.bf16 %v85_v21, %v84_v20  ;;  %v87_v27 = vld [vmem:[#allocation5 + $0x48] sm:$0xff]  ;;  %v102_v28 = vld [vmem:[#allocation5 + $0xc0] sm:$0xff]  ;;  %p1230_p7 = por %p1229_p6, %p1228_p5 }
  0x51   :  { %v1422_v25 = vpack.c.bf16 %v101_v23, %v100_v22  ;;  %v103_v29 = vld [vmem:[#allocation5 + $0xc8] sm:$0xff]  ;;  %v963_v30 = vpack.c.bf16 %v87_v27, %v86_v26  ;;  %v88_v32 = vld [vmem:[#allocation5 + $0x50] sm:$0xff]  ;;  %v89_v33 = vld [vmem:[#allocation5 + $0x58] sm:$0xff] }
  0x52   :  { %v1427_v31 = vpack.c.bf16 %v103_v29, %v102_v28  ;;  %v104_v34 = vld [vmem:[#allocation5 + $0xd0] sm:$0xff]  ;;  %v105_v35 = vld [vmem:[#allocation5 + $0xd8] sm:$0xff]  ;;  %v966_v36 = vpack.c.bf16 %v89_v33, %v88_v32  ;;  %v90_v38 = vld [vmem:[#allocation5 + $0x60] sm:$0xff]  ;;  %p1231_p8 = pnand %p1230_p7, %p1224_p4 }
  0x53   :  { %v1432_v37 = vpack.c.bf16 %v105_v35, %v104_v34  ;;  %v91_v39 = vld [vmem:[#allocation5 + $0x68] sm:$0xff]  ;;  %v106_v40 = vld [vmem:[#allocation5 + $0xe0] sm:$0xff]  ;;  %v92_v44 = vld [vmem:[#allocation5 + $0x70] sm:$0xff] }
  0x54   :  { %v107_v41 = vld [vmem:[#allocation5 + $0xe8] sm:$0xff]  ;;  %v969_v42 = vpack.c.bf16 %v91_v39, %v90_v38  ;;  %v93_v45 = vld [vmem:[#allocation5 + $0x78] sm:$0xff]  ;;  %v108_v46 = vld [vmem:[#allocation5 + $0xf0] sm:$0xff] }
  0x55   :  { %v1437_v43 = vpack.c.bf16 %v107_v41, %v106_v40  ;;  %v109_v47 = vld [vmem:[#allocation5 + $0xf8] sm:$0xff]  ;;  %v972_v48 = vpack.c.bf16 %v93_v45, %v92_v44  ;;  %v76_v50 = vld [vmem:[#allocation2] sm:$0xff]  ;;  %v429_v6 = vld [vmem:[#allocation8] sm:$0xff] }
  0x56   :  { %955 = vmatpush3.bf16.xpose.msra.mxu0 %v1406_v12  ;;  %v1442_v49 = vpack.c.bf16 %v109_v47, %v108_v46  ;;  %v1446_v51 = vld [vmem:[#allocation2 + $0x8] sm:$0xff]  ;;  %v430_v8 = vld [vmem:[#allocation8 + $0x8] sm:$0xff]  ;;  %v431_v9 = vld [vmem:[#allocation8 + $0x10] sm:$0xff] }
  0x57   :  { %979 = vmatpush3.bf16.xpose.msra.mxu1 %v1408_v13  ;;  %956 = vmatprep.subr.bf16.mxu0 %v1283_v0  ;;  %v1046_v10 = vpack.c.bf16 %v430_v8, %v429_v6  ;;  %v432_v11 = vld [vmem:[#allocation8 + $0x18] sm:$0xff]  ;;  %v433_v14 = vld [vmem:[#allocation8 + $0x20] sm:$0xff]  ;;  %v434_v15 = vld [vmem:[#allocation8 + $0x28] sm:$0xff] }
  0x58   :  { %980 = vmatprep.subr.bf16.mxu1 %v1283_v0  ;;  %v1054_v16 = vpack.c.bf16 %v434_v15, %v433_v14  ;;  %v435_v17 = vld [vmem:[#allocation8 + $0x30] sm:$0xff]  ;;  %v437_v21 = vld [vmem:[#allocation8 + $0x40] sm:$0xff]  ;;  %v438_v22 = vld [vmem:[#allocation8 + $0x48] sm:$0xff] }
  0x59   :  { %v1062_v23 = vpack.c.bf16 %v438_v22, %v437_v21  ;;  %v440_v26 = vld [vmem:[#allocation8 + $0x58] sm:$0xff]  ;;  %v441_v28 = vld [vmem:[#allocation8 + $0x60] sm:$0xff]  ;;  %v442_v29 = vld [vmem:[#allocation8 + $0x68] sm:$0xff] }
  0x5a   :  { %v443_v32 = vld [vmem:[#allocation8 + $0x70] sm:$0xff]  ;;  %v444_v33 = vld [vmem:[#allocation8 + $0x78] sm:$0xff]  ;;  %v418_v44 = vld [vmem:[#allocation7 + $0x28] sm:$0xff] }
  0x5b   :  { %v1074_v34 = vpack.c.bf16 %v444_v33, %v443_v32  ;;  %v419_v45 = vld [vmem:[#allocation7 + $0x30] sm:$0xff]  ;;  %v420_v46 = vld [vmem:[#allocation7 + $0x38] sm:$0xff]  ;;  %v422_v47 = vld [vmem:[#allocation7 + $0x48] sm:$0xff] }
  0x5c   :  { %v425_v52 = vld [vmem:[#allocation7 + $0x60] sm:$0xff]  ;;  %v426_v53 = vld [vmem:[#allocation7 + $0x68] sm:$0xff] }
  0x5e   :  { %958 = vmatpush3.bf16.xpose.msra.mxu0 %v1414_v18 }
  0x5f   :  { %982 = vmatpush3.bf16.xpose.msra.mxu1 %v1416_v19  ;;  %959 = vmatprep.subr.bf16.mxu0 %v1283_v0 }
  0x60   :  { %983 = vmatprep.subr.bf16.mxu1 %v1283_v0 }
  0x66   :  { %961 = vmatpush3.bf16.xpose.msra.mxu0 %v960_v24 }
  0x67   :  { %985 = vmatpush3.bf16.xpose.msra.mxu1 %v1422_v25  ;;  %962 = vmatprep.subr.bf16.mxu0 %v1283_v0 }
  0x68   :  { %986 = vmatprep.subr.bf16.mxu1 %v1283_v0 }
  0x6e   :  { %964 = vmatpush3.bf16.xpose.msra.mxu0 %v963_v30 }
  0x6f   :  { %988 = vmatpush3.bf16.xpose.msra.mxu1 %v1427_v31  ;;  %965 = vmatprep.subr.bf16.mxu0 %v1283_v0 }
  0x70   :  { %989 = vmatprep.subr.bf16.mxu1 %v1283_v0 }
  0x76   :  { %967 = vmatpush3.bf16.xpose.msra.mxu0 %v966_v36 }
  0x77   :  { %991 = vmatpush3.bf16.xpose.msra.mxu1 %v1432_v37  ;;  %968 = vmatprep.subr.bf16.mxu0 %v1283_v0 }
  0x78   :  { %992 = vmatprep.subr.bf16.mxu1 %v1283_v0 }
  0x7e   :  { %970 = vmatpush3.bf16.xpose.msra.mxu0 %v969_v42 }
  0x7f   :  { %994 = vmatpush3.bf16.xpose.msra.mxu1 %v1437_v43  ;;  %971 = vmatprep.subr.bf16.mxu0 %v1283_v0 }
  0x80   :  { %995 = vmatprep.subr.bf16.mxu1 %v1283_v0 }
  0x86   :  { %973 = vmatpush3.bf16.xpose.msra.mxu0 %v972_v48 }
  0x87   :  { %997 = vmatpush3.bf16.xpose.msra.mxu1 %v1442_v49  ;;  %1047 = vmatprep.subr.bf16.mxu0 %v1046_v10 }
  0x88   :  { %998 = vmatprep.subr.bf16.mxu1 %v1283_v0 }
  0x8d   :  { %773 = vmatmul.mubr.f32.vlgmr.msra.gmra.mrb[0].mxu0 %v76_v50 }
  0x8e   :  { %808 = vmatmul.mubr.f32.vlgmr.msra.gmra.mrb[0].mxu1 %v1446_v51  ;;  %912 = vmatprep.mubr.f32.mxu0 %v76_v50  ;;  %v424_v50 = vld [vmem:[#allocation7 + $0x58] sm:$0xff] }
  0x8f   :  { %1000 = vmatpush3.bf16.msra.mxu1 %v1398_v5  ;;  %842 = vmatprep.mubr.msk.f32.mxu1 %vm1284_vm0, %v1285_v1 }
  0x90   :  { %1001 = vmatprep.subr.bf16.mxu1 %v1283_v0  ;;  %1049 = vmatpush3.bf16.msra.mxu0 %v1046_v10 }
  0x93   :  { %1003 = vmatpush3.bf16.msra.mxu1 %v1406_v12  ;;  %v1050_v12 = vpack.c.bf16 %v432_v11, %v431_v9 }
  0x94   :  { %1004 = vmatprep.subr.bf16.mxu1 %v1283_v0 }
  0x95   :  { %1051 = vmatprep.subr.bf16.mxu0 %v1050_v12 }
  0x96   :  { %1053 = vmatpush3.bf16.msra.mxu0 %v1050_v12 }
  0x97   :  { %1006 = vmatpush3.bf16.msra.mxu1 %v1414_v18  ;;  %v436_v18 = vld [vmem:[#allocation8 + $0x38] sm:$0xff]  ;;  %1055 = vmatprep.subr.bf16.mxu0 %v1054_v16 }
  0x98   :  { %1007 = vmatprep.subr.bf16.mxu1 %v1283_v0  ;;  %v1058_v20 = vpack.c.bf16 %v436_v18, %v435_v17 }
  0x9a   :  { %1057 = vmatpush3.bf16.msra.mxu0 %v1054_v16 }
  0x9b   :  { %1009 = vmatpush3.bf16.msra.mxu1 %v960_v24  ;;  %1059 = vmatprep.subr.bf16.mxu0 %v1058_v20  ;;  %v439_v24 = vld [vmem:[#allocation8 + $0x50] sm:$0xff] }
  0x9c   :  { %1010 = vmatprep.subr.bf16.mxu1 %v1283_v0  ;;  %v1066_v27 = vpack.c.bf16 %v440_v26, %v439_v24 }
  0x9e   :  { %1061 = vmatpush3.bf16.msra.mxu0 %v1058_v20 }
  0x9f   :  { %1012 = vmatpush3.bf16.msra.mxu1 %v963_v30  ;;  %1063 = vmatprep.subr.bf16.mxu0 %v1062_v23  ;;  %v1070_v30 = vpack.c.bf16 %v442_v29, %v441_v28 }
  0xa0   :  { %1013 = vmatprep.subr.bf16.mxu1 %v1283_v0 }
  0xa2   :  { %1065 = vmatpush3.bf16.msra.mxu0 %v1062_v23 }
  0xa3   :  { %1015 = vmatpush3.bf16.msra.mxu1 %v966_v36  ;;  %1067 = vmatprep.subr.bf16.mxu0 %v1066_v27 }
  0xa4   :  { %1016 = vmatprep.subr.bf16.mxu1 %v1283_v0 }
  0xa6   :  { %1069 = vmatpush3.bf16.msra.mxu0 %v1066_v27 }
  0xa7   :  { %1018 = vmatpush3.bf16.msra.mxu1 %v969_v42  ;;  %1071 = vmatprep.subr.bf16.mxu0 %v1070_v30 }
  0xa8   :  { %1019 = vmatprep.subr.bf16.mxu1 %v1283_v0 }
  0xaa   :  { %1073 = vmatpush3.bf16.msra.mxu0 %v1070_v30 }
  0xab   :  { %1021 = vmatpush3.bf16.msra.mxu1 %v972_v48  ;;  %1075 = vmatprep.subr.bf16.mxu0 %v1074_v34 }
  0xac   :  { %1022 = vmatprep.subr.bf16.mxu1 %v1283_v0 }
  0xae   :  { %1077 = vmatpush3.bf16.msra.mxu0 %v1074_v34 }
  0xb1   :  { %913 = vmatmul.mubr.f32.vlgmr.msra.gmra.mrb[2].mxu0 %v1446_v51 }
 0x160   :  { %v176_v54 = vpop.f32.mrb[0].mxu0 }
 0x161   :  { %v774_v55 = vpop.f32.mrb[1].mxu0  ;;  %v253_v56 = vsel %vm252_vm1, %v176_v54, -1e+30  ;;  %v246_v57 = vpop.f32.mrb[0].mxu1  ;;  %v1102_v54 = vpack.c.bf16 %v426_v53, %v425_v52 }
 0x162   :  { %255 = vmax.xlane.f32.xlu0 %v253_v56  ;;  %v809_v58 = vpop.f32.mrb[1].mxu1  ;;  %v254_v59 = vsel %vm252_vm1, %v246_v57, -1e+30  ;;  %v427_v55 = vld [vmem:[#allocation7 + $0x70] sm:$0xff] }
 0x166   :  { %257 = vmax.xlane.f32.xlu0 %v254_v59 }
 0x1ef   :  { %v256_v60 = vpop.xlane.xlu0 %255 }
 0x1f0   :  { %v259_v61 = vsub.f32 %v253_v56, %v256_v60  ;;  %v428_v56 = vld [vmem:[#allocation7 + $0x78] sm:$0xff] }
 0x1f1   :  { %v1106_v57 = vpack.c.bf16 %v428_v56, %v427_v55 }
 0x1f2   :  { %v261_v62 = vmul.f32 1.442695, %v259_v61 }
 0x1f3   :  { %v258_v63 = vpop.xlane.xlu0 %257 }
 0x1f4   :  { %1123 = vpow2.f32 %v261_v62  ;;  %v260_v2 = vsub.f32 %v254_v59, %v258_v63 }
 0x1f6   :  { %v263_v3 = vmul.f32 1.442695, %v260_v2 }
 0x1f8   :  { %1125 = vpow2.f32 %v263_v3 }
 0x1fe   :  { %v1124_v4 = vpop.eup %1123 }
 0x1ff   :  { %265 = vadd.xlane.f32.xlu1 %v1124_v4 }
 0x202   :  { %v1126_v5 = vpop.eup %1125 }
 0x203   :  { %267 = vadd.xlane.f32.xlu1 %v1126_v5 }
 0x28c   :  { %v266_v35 = vpop.xlane.xlu1 %265 }
 0x28d   :  { %1127 = vrcp.f32 %v266_v35 }
 0x290   :  { %v268_v36 = vpop.xlane.xlu1 %267 }
 0x291   :  { %1129 = vrcp.f32 %v268_v36 }
 0x297   :  { %v1128_v38 = vpop.eup %1127 }
 0x298   :  { %v271_v39 = vmul.f32 %v1128_v38, %v1124_v4 }
 0x29a   :  { %843 = vmatmul.mubr.f32.vlgmr.msra.gmra.mrb[2].mxu1 %v271_v39  ;;  %599 = vst [vmem:[#allocation11] sm:$0xff] %v271_v39 }
 0x29b   :  { %v1130_v40 = vpop.eup %1129  ;;  %1024 = vmatpush3.bf16.msra.mxu1 %v1400_v7  ;;  %877 = vmatprep.mubr.msk.f32.mxu1 %vm1284_vm0, %v1285_v1  ;;  %v413_v1 = vld [vmem:[#allocation7] sm:$0xff]  ;;  %v414_v7 = vld [vmem:[#allocation7 + $0x8] sm:$0xff] }
 0x29c   :  { %1025 = vmatprep.subr.bf16.mxu1 %v1283_v0  ;;  %v272_v41 = vmul.f32 %v1130_v40, %v1126_v5 }
 0x29e   :  { %600 = vst [vmem:[#allocation11 + $0x8] sm:$0xff] %v272_v41 }
 0x29f   :  { %1027 = vmatpush3.bf16.msra.mxu1 %v1408_v13  ;;  %v1078_v13 = vpack.c.bf16 %v414_v7, %v413_v1 }
 0x2a0   :  { %1028 = vmatprep.subr.bf16.mxu1 %v1283_v0 }
 0x2a1   :  { %1079 = vmatprep.subr.bf16.mxu0 %v1078_v13 }
 0x2a2   :  { %1081 = vmatpush3.bf16.msra.mxu0 %v1078_v13 }
 0x2a3   :  { %1030 = vmatpush3.bf16.msra.mxu1 %v1416_v19  ;;  %v415_v19 = vld [vmem:[#allocation7 + $0x10] sm:$0xff] }
 0x2a4   :  { %1031 = vmatprep.subr.bf16.mxu1 %v1283_v0 }
 0x2a7   :  { %1033 = vmatpush3.bf16.msra.mxu1 %v1422_v25  ;;  %v416_v25 = vld [vmem:[#allocation7 + $0x18] sm:$0xff] }
 0x2a8   :  { %1034 = vmatprep.subr.bf16.mxu1 %v1283_v0  ;;  %v1082_v42 = vpack.c.bf16 %v416_v25, %v415_v19 }
 0x2aa   :  { %1083 = vmatprep.subr.bf16.mxu0 %v1082_v42 }
 0x2ab   :  { %1036 = vmatpush3.bf16.msra.mxu1 %v1427_v31  ;;  %v417_v31 = vld [vmem:[#allocation7 + $0x20] sm:$0xff]  ;;  %1085 = vmatpush3.bf16.msra.mxu0 %v1082_v42 }
 0x2ac   :  { %1037 = vmatprep.subr.bf16.mxu1 %v1283_v0 }
 0x2af   :  { %1039 = vmatpush3.bf16.msra.mxu1 %v1432_v37  ;;  %v1086_v37 = vpack.c.bf16 %v418_v44, %v417_v31 }
 0x2b0   :  { %1040 = vmatprep.subr.bf16.mxu1 %v1283_v0 }
 0x2b1   :  { %1087 = vmatprep.subr.bf16.mxu0 %v1086_v37 }
 0x2b2   :  { %1089 = vmatpush3.bf16.msra.mxu0 %v1086_v37 }
 0x2b3   :  { %1042 = vmatpush3.bf16.msra.mxu1 %v1437_v43  ;;  %v421_v43 = vld [vmem:[#allocation7 + $0x40] sm:$0xff] }
 0x2b4   :  { %1043 = vmatprep.subr.bf16.mxu1 %v1283_v0  ;;  %v1090_v0 = vpack.c.bf16 %v420_v46, %v419_v45  ;;  %v1094_v48 = vpack.c.bf16 %v422_v47, %v421_v43 }
 0x2b6   :  { %1091 = vmatprep.subr.bf16.mxu0 %v1090_v0 }
 0x2b7   :  { %1045 = vmatpush3.bf16.msra.mxu1 %v1442_v49  ;;  %v423_v49 = vld [vmem:[#allocation7 + $0x50] sm:$0xff]  ;;  %1093 = vmatpush3.bf16.msra.mxu0 %v1090_v0 }
 0x2b8   :  { %1095 = vmatprep.subr.bf16.mxu0 %v1094_v48  ;;  %v1098_v51 = vpack.c.bf16 %v424_v50, %v423_v49 }
 0x2ba   :  { %878 = vmatmul.mubr.f32.vlgmr.msra.gmra.mrb[4].mxu1 %v272_v41 }
 0x2bb   :  { %1097 = vmatpush3.bf16.msra.mxu0 %v1094_v48 }
 0x2bc   :  { %1099 = vmatprep.subr.bf16.mxu0 %v1098_v51 }
 0x2bf   :  { %1101 = vmatpush3.bf16.msra.mxu0 %v1098_v51 }
 0x2c0   :  { %1103 = vmatprep.subr.bf16.mxu0 %v1102_v54 }
 0x2c3   :  { %1105 = vmatpush3.bf16.msra.mxu0 %v1102_v54 }
 0x2c4   :  { %1107 = vmatprep.subr.bf16.mxu0 %v1106_v57 }
 0x2c7   :  { %1109 = vmatpush3.bf16.msra.mxu0 %v1106_v57 }
 0x36d   :  { %v339_v58 = vpop.f32.mrb[2].mxu1 }
 0x36e   :  { %v844_v59 = vpop.f32.mrb[3].mxu1  ;;  %947 = vmatprep.mubr.f32.mxu0 %v339_v58 }
 0x38d   :  { %v409_v60 = vpop.f32.mrb[4].mxu1 }
 0x38e   :  { %v879_v61 = vpop.f32.mrb[5].mxu1  ;;  %948 = vmatmul.mubr.f32.vlgmr.msra.gmra.mrb[2].mxu0 %v409_v60 }
 0x38f   :  { %1234 = shalt.err (!%p1231_p8)
}
 0x390   :  { %s1235_s20 = scalar_lea.hbm %s1515_s5, 256 }
 0x391   :  { %p1236_p9 = scmp.ne.s32.totalorder %s1515_s5, %s1235_s20  ;;  %p1239_p10 = scmp.lt.u32.totalorder %s1235_s20, %s1515_s5 }
 0x393   :  { %p1241_p11 = pnand %p1239_p10, %p1236_p9 }
 0x395   :  { %1244 = shalt.err (!%p1241_p11)
}
 0x396   :  { %624 = dma.vmem_to_hbm [thread:$0]  %s619_s1, 256, %s1515_s5, [#allocation12], %s1279_s30, %s1279_s30, %s1280_s6  }
 0x397   :  { %s1287_s28 = smov [#allocation10]  }
 0x398   :  { %s606_s29 = sshll.u32 %s1287_s28, 4  ;;  %s607_s29 = int_to_ptr.vmem [resolvable:$true] %s606_s29 }
 0x399   :  { %s1245_s0 = scalar_lea.vmem %s607_s29, 256  ;;  %p1250_p13 = scmp.lt.s32.totalorder %s607_s29, %s607_s29 }
 0x39a   :  { %p1246_p12 = scmp.ne.s32.totalorder %s607_s29, %s1245_s0  ;;  %p1251_p0 = scmp.lt.s32.totalorder %s1245_s0, %s1245_s0 }
 0x39c   :  { %p1252_p1 = por %p1251_p0, %p1250_p13 }
 0x39e   :  { %p1253_p2 = pnand %p1252_p1, %p1246_p12 }
 0x461   :  { %v949_v62 = vpop.f32.mrb[2].mxu0 }
 0x462   :  { %1131 = vtanh.f32 %v949_v62  ;;  %v586_v63 = vpop.f32.mrb[3].mxu0 }
 0x463   :  { %1133 = vtanh.f32 %v586_v63 }
 0x46c   :  { %v1132_v2 = vpop.eup %1131 }
 0x46d   :  { %v1134_v3 = vpop.eup %1133  ;;  %598 = vst [vmem:[#allocation10 + $0x8] sm:$0xff] %v1132_v2 }
 0x46e   :  { %597 = vst [vmem:[#allocation10] sm:$0xff] %v1134_v3 }
 0x46f   :  { %1256 = shalt.err (!%p1253_p2)
}
 0x470   :  { %s1257_s7 = scalar_lea.hbm %s1514_s4, 256 }
 0x471   :  { %p1258_p3 = scmp.ne.s32.totalorder %s1514_s4, %s1257_s7  ;;  %p1261_p4 = scmp.lt.u32.totalorder %s1257_s7, %s1514_s4 }
 0x473   :  { %p1263_p5 = pnand %p1261_p4, %p1258_p3 }
 0x475   :  { %1266 = shalt.err (!%p1263_p5)
}
 0x476   :  { %612 = dma.vmem_to_hbm [thread:$0]  %s607_s29, 256, %s1514_s4, [#allocation4], %s1279_s30, %s1279_s30, %s1280_s6  }
 0x477   :  { %1273 = dma.done.wait [#allocation4], 256  }
 0x478   :  { %1274 = vsyncadd [#allocation4], 4294967040 }
 0x479   :  { %1275 = dma.done.wait [#allocation12], 256  }
 0x47a   :  { %1276 = vsyncadd [#allocation12], 4294967040 }
 0x47b   :  { %631 = vsyncpa [#allocation3], 1 }
 0x47c   :  { %632 = vsyncpa [#allocation6], 1 }
 0x47d   :  { %633 = vsyncpa [#allocation9], 1 }
 0x47e   :  { %634 = vsyncpa [#allocation4], 1 }
 0x47f   :  { %635 = vsyncpa [#allocation12], 1 }

// kernel: tpu_custom_call.1
= control target key start
LH: loop header
LB: loop body
LE: loop exit
PB: predicated region body
PF: predicated region fallthrough
CT: control target
= control target key end

     0   :  { %11 = vsyncpa [#allocation3], 0  ;;  %s1510_s0 = inlined_call_operand.hbm [shape: f32[2,8,128], index: 0, kind: input, shape index: {}]   ;;  %s1511_s1 = inlined_call_operand.hbm [shape: f32[2,128,128], index: 1, kind: input, shape index: {}]   ;;  %s1512_s2 = inlined_call_operand.hbm [shape: f32[128,128], index: 2, kind: input, shape index: {}]   ;;  %s1513_s3 = inlined_call_operand.hbm [shape: f32[128,128], index: 3, kind: input, shape index: {}]   ;;  %s1514_s4 = inlined_call_operand.hbm [shape: f32[2,8,128], index: 4, kind: output, shape index: {0}]   ;;  %s1515_s5 = inlined_call_operand.hbm [shape: f32[2,8,128], index: 5, kind: output, shape index: {1}]  }
   0x1   :  { %12 = vsyncpa [#allocation6], 0 }
   0x2   :  { %13 = vsyncpa [#allocation9], 0 }
   0x3   :  { %14 = vsyncpa [#allocation4], 0 }
   0x4   :  { %15 = vsyncpa [#allocation12], 0  ;;  %s1277_s18 = smov [#allocation5]   ;;  %s1278_s20 = smov [#allocation2]  }
   0x5   :  { %s33_s19 = sshll.u32 %s1277_s18, 4  ;;  %s21_s21 = sshll.u32 %s1278_s20, 4  ;;  %s34_s19 = int_to_ptr.vmem [resolvable:$true] %s33_s19  ;;  %s1318_s21 = int_to_ptr.vmem [resolvable:$true] %s21_s21 }
   0x6   :  { %s1135_s24 = scalar_lea.hbm %s1511_s1, 4096 }
   0x7   :  { %p1136_p0 = scmp.ne.s32.totalorder %s1511_s1, %s1135_s24  ;;  %p1139_p1 = scmp.lt.u32.totalorder %s1135_s24, %s1511_s1 }
   0x9   :  { %p1141_p2 = pnand %p1139_p1, %p1136_p0 }
   0xb   :  { %1144 = shalt.err (!%p1141_p2)
}
   0xc   :  { %s1145_s29 = scalar_lea.vmem %s34_s19, 4096  ;;  %p1150_p4 = scmp.lt.s32.totalorder %s34_s19, %s34_s19 }
   0xd   :  { %p1146_p3 = scmp.ne.s32.totalorder %s34_s19, %s1145_s29  ;;  %p1151_p5 = scmp.lt.s32.totalorder %s1145_s29, %s1145_s29 }
   0xf   :  { %p1152_p6 = por %p1151_p5, %p1150_p4 }
  0x11   :  { %p1153_p7 = pnand %p1152_p6, %p1146_p3 }
  0x13   :  { %1156 = shalt.err (!%p1153_p7)
}
  0x14   :  { %s1279_s30 = smov 128   ;;  %s1280_s6 = smov 8  }
  0x15   :  { %39 = dma.hbm_to_vmem [thread:$0]  %s1511_s1, 4096, %s34_s19, [#allocation6], %s1279_s30, %s1279_s30, %s1280_s6  }
  0x16   :  { %s1157_s11 = scalar_lea.hbm %s1510_s0, 256 }
  0x17   :  { %p1158_p8 = scmp.ne.s32.totalorder %s1510_s0, %s1157_s11  ;;  %p1161_p9 = scmp.lt.u32.totalorder %s1157_s11, %s1510_s0 }
  0x19   :  { %p1163_p10 = pnand %p1161_p9, %p1158_p8 }
  0x1b   :  { %1166 = shalt.err (!%p1163_p10)
}
  0x1c   :  { %s1167_s16 = scalar_lea.vmem %s1318_s21, 256  ;;  %p1172_p12 = scmp.lt.s32.totalorder %s1318_s21, %s1318_s21 }
  0x1d   :  { %p1168_p11 = scmp.ne.s32.totalorder %s1318_s21, %s1167_s16  ;;  %p1173_p13 = scmp.lt.s32.totalorder %s1167_s16, %s1167_s16 }
  0x1f   :  { %p1174_p0 = por %p1173_p13, %p1172_p12 }
  0x21   :  { %p1175_p1 = pnand %p1174_p0, %p1168_p11 }
  0x23   :  { %1178 = shalt.err (!%p1175_p1)
}
  0x24   :  { %27 = dma.hbm_to_vmem [thread:$0]  %s1510_s0, 256, %s1318_s21, [#allocation3], %s1279_s30, %s1279_s30, %s1280_s6  }
  0x25   :  { %s1281_s18 = smov [#allocation7]   ;;  %s1282_s20 = smov [#allocation8]  }
  0x26   :  { %s45_s19 = sshll.u32 %s1281_s18, 4  ;;  %s57_s22 = sshll.u32 %s1282_s20, 4  ;;  %s46_s19 = int_to_ptr.vmem [resolvable:$true] %s45_s19  ;;  %s1355_s22 = int_to_ptr.vmem [resolvable:$true] %s57_s22 }
  0x27   :  { %s1179_s25 = scalar_lea.hbm %s1512_s2, 2048 }
  0x28   :  { %p1180_p2 = scmp.ne.s32.totalorder %s1512_s2, %s1179_s25  ;;  %p1183_p3 = scmp.lt.u32.totalorder %s1179_s25, %s1512_s2 }
  0x2a   :  { %p1185_p4 = pnand %p1183_p3, %p1180_p2 }
  0x2c   :  { %1188 = shalt.err (!%p1185_p4)
}
  0x2d   :  { %s1189_s0 = scalar_lea.vmem %s46_s19, 2048  ;;  %p1194_p6 = scmp.lt.s32.totalorder %s46_s19, %s46_s19 }
  0x2e   :  { %p1190_p5 = scmp.ne.s32.totalorder %s46_s19, %s1189_s0  ;;  %p1195_p7 = scmp.lt.s32.totalorder %s1189_s0, %s1189_s0 }
  0x30   :  { %p1196_p8 = por %p1195_p7, %p1194_p6 }
  0x32   :  { %p1197_p9 = pnand %p1196_p8, %p1190_p5 }
  0x34   :  { %1200 = shalt.err (!%p1197_p9)
}
  0x35   :  { %51 = dma.hbm_to_vmem [thread:$0]  %s1512_s2, 2048, %s46_s19, [#allocation6], %s1279_s30, %s1279_s30, %s1280_s6  }
  0x36   :  { %s1201_s10 = scalar_lea.hbm %s1513_s3, 2048 }
  0x37   :  { %p1202_p10 = scmp.ne.s32.totalorder %s1513_s3, %s1201_s10  ;;  %p1205_p11 = scmp.lt.u32.totalorder %s1201_s10, %s1513_s3 }
  0x39   :  { %p1207_p12 = pnand %p1205_p11, %p1202_p10 }
  0x3b   :  { %1210 = shalt.err (!%p1207_p12)
}
  0x3c   :  { %s1211_s15 = scalar_lea.vmem %s1355_s22, 2048  ;;  %p1216_p0 = scmp.lt.s32.totalorder %s1355_s22, %s1355_s22 }
  0x3d   :  { %p1212_p13 = scmp.ne.s32.totalorder %s1355_s22, %s1211_s15  ;;  %p1217_p1 = scmp.lt.s32.totalorder %s1211_s15, %s1211_s15 }
  0x3f   :  { %p1218_p2 = por %p1217_p1, %p1216_p0 }
  0x41   :  { %p1219_p3 = pnand %p1218_p2, %p1212_p13 }
  0x43   :  { %1222 = shalt.err (!%p1219_p3)
}
  0x44   :  { %63 = dma.hbm_to_vmem [thread:$0]  %s1513_s3, 2048, %s1355_s22, [#allocation9], %s1279_s30, %s1279_s30, %s1280_s6  }
  0x45   :  { %1267 = dma.done.wait [#allocation3], 256  }
  0x46   :  { %1268 = vsyncadd [#allocation3], 4294967040 }
  0x47   :  { %1269 = dma.done.wait [#allocation6], 6144  }
  0x48   :  { %1270 = vsyncadd [#allocation6], 4294961152 }
  0x49   :  { %1271 = dma.done.wait [#allocation9], 2048  }
  0x4a   :  { %1272 = vsyncadd [#allocation9], 4294965248  ;;  %v1283_v0 = vmov 0.0|0.0   ;;  %vm1284_vm0 = vmmov 0   ;;  %v1285_v1 = vmov 0.0   ;;  %v78_v2 = vld [vmem:[#allocation5] sm:$0xff]  ;;  %v250_v52 = vlaneseq }
  0x4b   :  { %950 = vmatprep.subr.bf16.mxu0 %v1283_v0  ;;  %974 = vmatprep.subr.bf16.mxu1 %v1283_v0  ;;  %v79_v3 = vld [vmem:[#allocation5 + $0x8] sm:$0xff]  ;;  %v94_v4 = vld [vmem:[#allocation5 + $0x80] sm:$0xff]  ;;  %v80_v8 = vld [vmem:[#allocation5 + $0x10] sm:$0xff]  ;;  %s1286_s3 = smov [#allocation11]  }
  0x4c   :  { %772 = vmatprep.mubr.msk.f32.mxu0 %vm1284_vm0, %v1285_v1  ;;  %807 = vmatprep.mubr.msk.f32.mxu1 %vm1284_vm0, %v1285_v1  ;;  %v1398_v5 = vpack.c.bf16 %v79_v3, %v78_v2  ;;  %v95_v6 = vld [vmem:[#allocation5 + $0x88] sm:$0xff]  ;;  %v81_v9 = vld [vmem:[#allocation5 + $0x18] sm:$0xff]  ;;  %v96_v10 = vld [vmem:[#allocation5 + $0x90] sm:$0xff]  ;;  %v251_v53 = vand.u32 127, %v250_v52  ;;  %s618_s1 = sshll.u32 %s1286_s3, 4  ;;  %s619_s1 = int_to_ptr.vmem [resolvable:$true] %s618_s1 }
  0x4d   :  { %v1400_v7 = vpack.c.bf16 %v95_v6, %v94_v4  ;;  %v97_v11 = vld [vmem:[#allocation5 + $0x98] sm:$0xff]  ;;  %v1406_v12 = vpack.c.bf16 %v81_v9, %v80_v8  ;;  %v82_v14 = vld [vmem:[#allocation5 + $0x20] sm:$0xff]  ;;  %v83_v15 = vld [vmem:[#allocation5 + $0x28] sm:$0xff]  ;;  %s1223_s17 = scalar_lea.vmem %s619_s1, 256  ;;  %p1228_p5 = scmp.lt.s32.totalorder %s619_s1, %s619_s1 }
  0x4e   :  { %952 = vmatpush3.bf16.xpose.msra.mxu0 %v1398_v5  ;;  %v1408_v13 = vpack.c.bf16 %v97_v11, %v96_v10  ;;  %v98_v16 = vld [vmem:[#allocation5 + $0xa0] sm:$0xff]  ;;  %v99_v17 = vld [vmem:[#allocation5 + $0xa8] sm:$0xff]  ;;  %v1414_v18 = vpack.c.bf16 %v83_v15, %v82_v14  ;;  %v84_v20 = vld [vmem:[#allocation5 + $0x30] sm:$0xff]  ;;  %vm252_vm1 = vcmp.lt.s32.totalorder %v251_v53, 8  ;;  %p1224_p4 = scmp.ne.s32.totalorder %s619_s1, %s1223_s17  ;;  %p1229_p6 = scmp.lt.s32.totalorder %s1223_s17, %s1223_s17 }
  0x4f   :  { %976 = vmatpush3.bf16.xpose.msra.mxu1 %v1400_v7  ;;  %953 = vmatprep.subr.bf16.mxu0 %v1283_v0  ;;  %v1416_v19 = vpack.c.bf16 %v99_v17, %v98_v16  ;;  %v85_v21 = vld [vmem:[#allocation5 + $0x38] sm:$0xff]  ;;  %v100_v22 = vld [vmem:[#allocation5 + $0xb0] sm:$0xff]  ;;  %v86_v26 = vld [vmem:[#allocation5 + $0x40] sm:$0xff] }
  0x50   :  { %977 = vmatprep.subr.bf16.mxu1 %v1283_v0  ;;  %v101_v23 = vld [vmem:[#allocation5 + $0xb8] sm:$0xff]  ;;  %v960_v24 = vpack.c.bf16 %v85_v21, %v84_v20  ;;  %v87_v27 = vld [vmem:[#allocation5 + $0x48] sm:$0xff]  ;;  %v102_v28 = vld [vmem:[#allocation5 + $0xc0] sm:$0xff]  ;;  %p1230_p7 = por %p1229_p6, %p1228_p5 }
  0x51   :  { %v1422_v25 = vpack.c.bf16 %v101_v23, %v100_v22  ;;  %v103_v29 = vld [vmem:[#allocation5 + $0xc8] sm:$0xff]  ;;  %v963_v30 = vpack.c.bf16 %v87_v27, %v86_v26  ;;  %v88_v32 = vld [vmem:[#allocation5 + $0x50] sm:$0xff]  ;;  %v89_v33 = vld [vmem:[#allocation5 + $0x58] sm:$0xff] }
  0x52   :  { %v1427_v31 = vpack.c.bf16 %v103_v29, %v102_v28  ;;  %v104_v34 = vld [vmem:[#allocation5 + $0xd0] sm:$0xff]  ;;  %v105_v35 = vld [vmem:[#allocation5 + $0xd8] sm:$0xff]  ;;  %v966_v36 = vpack.c.bf16 %v89_v33, %v88_v32  ;;  %v90_v38 = vld [vmem:[#allocation5 + $0x60] sm:$0xff]  ;;  %p1231_p8 = pnand %p1230_p7, %p1224_p4 }
  0x53   :  { %v1432_v37 = vpack.c.bf16 %v105_v35, %v104_v34  ;;  %v91_v39 = vld [vmem:[#allocation5 + $0x68] sm:$0xff]  ;;  %v106_v40 = vld [vmem:[#allocation5 + $0xe0] sm:$0xff]  ;;  %v92_v44 = vld [vmem:[#allocation5 + $0x70] sm:$0xff] }
  0x54   :  { %v107_v41 = vld [vmem:[#allocation5 + $0xe8] sm:$0xff]  ;;  %v969_v42 = vpack.c.bf16 %v91_v39, %v90_v38  ;;  %v93_v45 = vld [vmem:[#allocation5 + $0x78] sm:$0xff]  ;;  %v108_v46 = vld [vmem:[#allocation5 + $0xf0] sm:$0xff] }
  0x55   :  { %v1437_v43 = vpack.c.bf16 %v107_v41, %v106_v40  ;;  %v109_v47 = vld [vmem:[#allocation5 + $0xf8] sm:$0xff]  ;;  %v972_v48 = vpack.c.bf16 %v93_v45, %v92_v44  ;;  %v76_v50 = vld [vmem:[#allocation2] sm:$0xff]  ;;  %v429_v6 = vld [vmem:[#allocation8] sm:$0xff] }
  0x56   :  { %955 = vmatpush3.bf16.xpose.msra.mxu0 %v1406_v12  ;;  %v1442_v49 = vpack.c.bf16 %v109_v47, %v108_v46  ;;  %v1446_v51 = vld [vmem:[#allocation2 + $0x8] sm:$0xff]  ;;  %v430_v8 = vld [vmem:[#allocation8 + $0x8] sm:$0xff]  ;;  %v431_v9 = vld [vmem:[#allocation8 + $0x10] sm:$0xff] }
  0x57   :  { %979 = vmatpush3.bf16.xpose.msra.mxu1 %v1408_v13  ;;  %956 = vmatprep.subr.bf16.mxu0 %v1283_v0  ;;  %v1046_v10 = vpack.c.bf16 %v430_v8, %v429_v6  ;;  %v432_v11 = vld [vmem:[#allocation8 + $0x18] sm:$0xff]  ;;  %v433_v14 = vld [vmem:[#allocation8 + $0x20] sm:$0xff]  ;;  %v434_v15 = vld [vmem:[#allocation8 + $0x28] sm:$0xff] }
  0x58   :  { %980 = vmatprep.subr.bf16.mxu1 %v1283_v0  ;;  %v1054_v16 = vpack.c.bf16 %v434_v15, %v433_v14  ;;  %v435_v17 = vld [vmem:[#allocation8 + $0x30] sm:$0xff]  ;;  %v437_v21 = vld [vmem:[#allocation8 + $0x40] sm:$0xff]  ;;  %v438_v22 = vld [vmem:[#allocation8 + $0x48] sm:$0xff] }
  0x59   :  { %v1062_v23 = vpack.c.bf16 %v438_v22, %v437_v21  ;;  %v440_v26 = vld [vmem:[#allocation8 + $0x58] sm:$0xff]  ;;  %v441_v28 = vld [vmem:[#allocation8 + $0x60] sm:$0xff]  ;;  %v442_v29 = vld [vmem:[#allocation8 + $0x68] sm:$0xff] }
  0x5a   :  { %v443_v32 = vld [vmem:[#allocation8 + $0x70] sm:$0xff]  ;;  %v444_v33 = vld [vmem:[#allocation8 + $0x78] sm:$0xff]  ;;  %v418_v44 = vld [vmem:[#allocation7 + $0x28] sm:$0xff] }
  0x5b   :  { %v1074_v34 = vpack.c.bf16 %v444_v33, %v443_v32  ;;  %v419_v45 = vld [vmem:[#allocation7 + $0x30] sm:$0xff]  ;;  %v420_v46 = vld [vmem:[#allocation7 + $0x38] sm:$0xff]  ;;  %v422_v47 = vld [vmem:[#allocation7 + $0x48] sm:$0xff] }
  0x5c   :  { %v425_v52 = vld [vmem:[#allocation7 + $0x60] sm:$0xff]  ;;  %v426_v53 = vld [vmem:[#allocation7 + $0x68] sm:$0xff] }
  0x5e   :  { %958 = vmatpush3.bf16.xpose.msra.mxu0 %v1414_v18 }
  0x5f   :  { %982 = vmatpush3.bf16.xpose.msra.mxu1 %v1416_v19  ;;  %959 = vmatprep.subr.bf16.mxu0 %v1283_v0 }
  0x60   :  { %983 = vmatprep.subr.bf16.mxu1 %v1283_v0 }
  0x66   :  { %961 = vmatpush3.bf16.xpose.msra.mxu0 %v960_v24 }
  0x67   :  { %985 = vmatpush3.bf16.xpose.msra.mxu1 %v1422_v25  ;;  %962 = vmatprep.subr.bf16.mxu0 %v1283_v0 }
  0x68   :  { %986 = vmatprep.subr.bf16.mxu1 %v1283_v0 }
  0x6e   :  { %964 = vmatpush3.bf16.xpose.msra.mxu0 %v963_v30 }
  0x6f   :  { %988 = vmatpush3.bf16.xpose.msra.mxu1 %v1427_v31  ;;  %965 = vmatprep.subr.bf16.mxu0 %v1283_v0 }
  0x70   :  { %989 = vmatprep.subr.bf16.mxu1 %v1283_v0 }
  0x76   :  { %967 = vmatpush3.bf16.xpose.msra.mxu0 %v966_v36 }
  0x77   :  { %991 = vmatpush3.bf16.xpose.msra.mxu1 %v1432_v37  ;;  %968 = vmatprep.subr.bf16.mxu0 %v1283_v0 }
  0x78   :  { %992 = vmatprep.subr.bf16.mxu1 %v1283_v0 }
  0x7e   :  { %970 = vmatpush3.bf16.xpose.msra.mxu0 %v969_v42 }
  0x7f   :  { %994 = vmatpush3.bf16.xpose.msra.mxu1 %v1437_v43  ;;  %971 = vmatprep.subr.bf16.mxu0 %v1283_v0 }
  0x80   :  { %995 = vmatprep.subr.bf16.mxu1 %v1283_v0 }
  0x86   :  { %973 = vmatpush3.bf16.xpose.msra.mxu0 %v972_v48 }
  0x87   :  { %997 = vmatpush3.bf16.xpose.msra.mxu1 %v1442_v49  ;;  %1047 = vmatprep.subr.bf16.mxu0 %v1046_v10 }
  0x88   :  { %998 = vmatprep.subr.bf16.mxu1 %v1283_v0 }
  0x8d   :  { %773 = vmatmul.mubr.f32.vlgmr.msra.gmra.mrb[0].mxu0 %v76_v50 }
  0x8e   :  { %808 = vmatmul.mubr.f32.vlgmr.msra.gmra.mrb[0].mxu1 %v1446_v51  ;;  %912 = vmatprep.mubr.f32.mxu0 %v76_v50  ;;  %v424_v50 = vld [vmem:[#allocation7 + $0x58] sm:$0xff] }
  0x8f   :  { %1000 = vmatpush3.bf16.msra.mxu1 %v1398_v5  ;;  %842 = vmatprep.mubr.msk.f32.mxu1 %vm1284_vm0, %v1285_v1 }
  0x90   :  { %1001 = vmatprep.subr.bf16.mxu1 %v1283_v0  ;;  %1049 = vmatpush3.bf16.msra.mxu0 %v1046_v10 }
  0x93   :  { %1003 = vmatpush3.bf16.msra.mxu1 %v1406_v12  ;;  %v1050_v12 = vpack.c.bf16 %v432_v11, %v431_v9 }
  0x94   :  { %1004 = vmatprep.subr.bf16.mxu1 %v1283_v0 }
  0x95   :  { %1051 = vmatprep.subr.bf16.mxu0 %v1050_v12 }
  0x96   :  { %1053 = vmatpush3.bf16.msra.mxu0 %v1050_v12 }
  0x97   :  { %1006 = vmatpush3.bf16.msra.mxu1 %v1414_v18  ;;  %v436_v18 = vld [vmem:[#allocation8 + $0x38] sm:$0xff]  ;;  %1055 = vmatprep.subr.bf16.mxu0 %v1054_v16 }
  0x98   :  { %1007 = vmatprep.subr.bf16.mxu1 %v1283_v0  ;;  %v1058_v20 = vpack.c.bf16 %v436_v18, %v435_v17 }
  0x9a   :  { %1057 = vmatpush3.bf16.msra.mxu0 %v1054_v16 }
  0x9b   :  { %1009 = vmatpush3.bf16.msra.mxu1 %v960_v24  ;;  %1059 = vmatprep.subr.bf16.mxu0 %v1058_v20  ;;  %v439_v24 = vld [vmem:[#allocation8 + $0x50] sm:$0xff] }
  0x9c   :  { %1010 = vmatprep.subr.bf16.mxu1 %v1283_v0  ;;  %v1066_v27 = vpack.c.bf16 %v440_v26, %v439_v24 }
  0x9e   :  { %1061 = vmatpush3.bf16.msra.mxu0 %v1058_v20 }
  0x9f   :  { %1012 = vmatpush3.bf16.msra.mxu1 %v963_v30  ;;  %1063 = vmatprep.subr.bf16.mxu0 %v1062_v23  ;;  %v1070_v30 = vpack.c.bf16 %v442_v29, %v441_v28 }
  0xa0   :  { %1013 = vmatprep.subr.bf16.mxu1 %v1283_v0 }
  0xa2   :  { %1065 = vmatpush3.bf16.msra.mxu0 %v1062_v23 }
  0xa3   :  { %1015 = vmatpush3.bf16.msra.mxu1 %v966_v36  ;;  %1067 = vmatprep.subr.bf16.mxu0 %v1066_v27 }
  0xa4   :  { %1016 = vmatprep.subr.bf16.mxu1 %v1283_v0 }
  0xa6   :  { %1069 = vmatpush3.bf16.msra.mxu0 %v1066_v27 }
  0xa7   :  { %1018 = vmatpush3.bf16.msra.mxu1 %v969_v42  ;;  %1071 = vmatprep.subr.bf16.mxu0 %v1070_v30 }
  0xa8   :  { %1019 = vmatprep.subr.bf16.mxu1 %v1283_v0 }
  0xaa   :  { %1073 = vmatpush3.bf16.msra.mxu0 %v1070_v30 }
  0xab   :  { %1021 = vmatpush3.bf16.msra.mxu1 %v972_v48  ;;  %1075 = vmatprep.subr.bf16.mxu0 %v1074_v34 }
  0xac   :  { %1022 = vmatprep.subr.bf16.mxu1 %v1283_v0 }
  0xae   :  { %1077 = vmatpush3.bf16.msra.mxu0 %v1074_v34 }
  0xb1   :  { %913 = vmatmul.mubr.f32.vlgmr.msra.gmra.mrb[2].mxu0 %v1446_v51 }
 0x160   :  { %v176_v54 = vpop.f32.mrb[0].mxu0 }
 0x161   :  { %v774_v55 = vpop.f32.mrb[1].mxu0  ;;  %v253_v56 = vsel %vm252_vm1, %v176_v54, -1e+30  ;;  %v246_v57 = vpop.f32.mrb[0].mxu1  ;;  %v1102_v54 = vpack.c.bf16 %v426_v53, %v425_v52 }
 0x162   :  { %255 = vmax.xlane.f32.xlu0 %v253_v56  ;;  %v809_v58 = vpop.f32.mrb[1].mxu1  ;;  %v254_v59 = vsel %vm252_vm1, %v246_v57, -1e+30  ;;  %v427_v55 = vld [vmem:[#allocation7 + $0x70] sm:$0xff] }
 0x166   :  { %257 = vmax.xlane.f32.xlu0 %v254_v59 }
 0x1ef   :  { %v256_v60 = vpop.xlane.xlu0 %255 }
 0x1f0   :  { %v259_v61 = vsub.f32 %v253_v56, %v256_v60  ;;  %v428_v56 = vld [vmem:[#allocation7 + $0x78] sm:$0xff] }
 0x1f1   :  { %v1106_v57 = vpack.c.bf16 %v428_v56, %v427_v55 }
 0x1f2   :  { %v261_v62 = vmul.f32 1.442695, %v259_v61 }
 0x1f3   :  { %v258_v63 = vpop.xlane.xlu0 %257 }
 0x1f4   :  { %1123 = vpow2.f32 %v261_v62  ;;  %v260_v2 = vsub.f32 %v254_v59, %v258_v63 }
 0x1f6   :  { %v263_v3 = vmul.f32 1.442695, %v260_v2 }
 0x1f8   :  { %1125 = vpow2.f32 %v263_v3 }
 0x1fe   :  { %v1124_v4 = vpop.eup %1123 }
 0x1ff   :  { %265 = vadd.xlane.f32.xlu1 %v1124_v4 }
 0x202   :  { %v1126_v5 = vpop.eup %1125 }
 0x203   :  { %267 = vadd.xlane.f32.xlu1 %v1126_v5 }
 0x28c   :  { %v266_v35 = vpop.xlane.xlu1 %265 }
 0x28d   :  { %1127 = vrcp.f32 %v266_v35 }
 0x290   :  { %v268_v36 = vpop.xlane.xlu1 %267 }
 0x291   :  { %1129 = vrcp.f32 %v268_v36 }
 0x297   :  { %v1128_v38 = vpop.eup %1127 }
 0x298   :  { %v271_v39 = vmul.f32 %v1128_v38, %v1124_v4 }
 0x29a   :  { %843 = vmatmul.mubr.f32.vlgmr.msra.gmra.mrb[2].mxu1 %v271_v39  ;;  %599 = vst [vmem:[#allocation11] sm:$0xff] %v271_v39 }
 0x29b   :  { %v1130_v40 = vpop.eup %1129  ;;  %1024 = vmatpush3.bf16.msra.mxu1 %v1400_v7  ;;  %877 = vmatprep.mubr.msk.f32.mxu1 %vm1284_vm0, %v1285_v1  ;;  %v413_v1 = vld [vmem:[#allocation7] sm:$0xff]  ;;  %v414_v7 = vld [vmem:[#allocation7 + $0x8] sm:$0xff] }
 0x29c   :  { %1025 = vmatprep.subr.bf16.mxu1 %v1283_v0  ;;  %v272_v41 = vmul.f32 %v1130_v40, %v1126_v5 }
 0x29e   :  { %600 = vst [vmem:[#allocation11 + $0x8] sm:$0xff] %v272_v41 }
 0x29f   :  { %1027 = vmatpush3.bf16.msra.mxu1 %v1408_v13  ;;  %v1078_v13 = vpack.c.bf16 %v414_v7, %v413_v1 }
 0x2a0   :  { %1028 = vmatprep.subr.bf16.mxu1 %v1283_v0 }
 0x2a1   :  { %1079 = vmatprep.subr.bf16.mxu0 %v1078_v13 }
 0x2a2   :  { %1081 = vmatpush3.bf16.msra.mxu0 %v1078_v13 }
 0x2a3   :  { %1030 = vmatpush3.bf16.msra.mxu1 %v1416_v19  ;;  %v415_v19 = vld [vmem:[#allocation7 + $0x10] sm:$0xff] }
 0x2a4   :  { %1031 = vmatprep.subr.bf16.mxu1 %v1283_v0 }
 0x2a7   :  { %1033 = vmatpush3.bf16.msra.mxu1 %v1422_v25  ;;  %v416_v25 = vld [vmem:[#allocation7 + $0x18] sm:$0xff] }
 0x2a8   :  { %1034 = vmatprep.subr.bf16.mxu1 %v1283_v0  ;;  %v1082_v42 = vpack.c.bf16 %v416_v25, %v415_v19 }
 0x2aa   :  { %1083 = vmatprep.subr.bf16.mxu0 %v1082_v42 }
 0x2ab   :  { %1036 = vmatpush3.bf16.msra.mxu1 %v1427_v31  ;;  %v417_v31 = vld [vmem:[#allocation7 + $0x20] sm:$0xff]  ;;  %1085 = vmatpush3.bf16.msra.mxu0 %v1082_v42 }
 0x2ac   :  { %1037 = vmatprep.subr.bf16.mxu1 %v1283_v0 }
 0x2af   :  { %1039 = vmatpush3.bf16.msra.mxu1 %v1432_v37  ;;  %v1086_v37 = vpack.c.bf16 %v418_v44, %v417_v31 }
 0x2b0   :  { %1040 = vmatprep.subr.bf16.mxu1 %v1283_v0 }
 0x2b1   :  { %1087 = vmatprep.subr.bf16.mxu0 %v1086_v37 }
 0x2b2   :  { %1089 = vmatpush3.bf16.msra.mxu0 %v1086_v37 }
 0x2b3   :  { %1042 = vmatpush3.bf16.msra.mxu1 %v1437_v43  ;;  %v421_v43 = vld [vmem:[#allocation7 + $0x40] sm:$0xff] }
 0x2b4   :  { %1043 = vmatprep.subr.bf16.mxu1 %v1283_v0  ;;  %v1090_v0 = vpack.c.bf16 %v420_v46, %v419_v45  ;;  %v1094_v48 = vpack.c.bf16 %v422_v47, %v421_v43 }
 0x2b6   :  { %1091 = vmatprep.subr.bf16.mxu0 %v1090_v0 }
 0x2b7   :  { %1045 = vmatpush3.bf16.msra.mxu1 %v1442_v49  ;;  %v423_v49 = vld [vmem:[#allocation7 + $0x50] sm:$0xff]  ;;  %1093 = vmatpush3.bf16.msra.mxu0 %v1090_v0 }
 0x2b8   :  { %1095 = vmatprep.subr.bf16.mxu0 %v1094_v48  ;;  %v1098_v51 = vpack.c.bf16 %v424_v50, %v423_v49 }
 0x2ba   :  { %878 = vmatmul.mubr.f32.vlgmr.msra.gmra.mrb[4].mxu1 %v272_v41 }
 0x2bb   :  { %1097 = vmatpush3.bf16.msra.mxu0 %v1094_v48 }
 0x2bc   :  { %1099 = vmatprep.subr.bf16.mxu0 %v1098_v51 }
 0x2bf   :  { %1101 = vmatpush3.bf16.msra.mxu0 %v1098_v51 }
 0x2c0   :  { %1103 = vmatprep.subr.bf16.mxu0 %v1102_v54 }
 0x2c3   :  { %1105 = vmatpush3.bf16.msra.mxu0 %v1102_v54 }
 0x2c4   :  { %1107 = vmatprep.subr.bf16.mxu0 %v1106_v57 }
 0x2c7   :  { %1109 = vmatpush3.bf16.msra.mxu0 %v1106_v57 }
 0x36d   :  { %v339_v58 = vpop.f32.mrb[2].mxu1 }
 0x36e   :  { %v844_v59 = vpop.f32.mrb[3].mxu1  ;;  %947 = vmatprep.mubr.f32.mxu0 %v339_v58 }
 0x38d   :  { %v409_v60 = vpop.f32.mrb[4].mxu1 }
 0x38e   :  { %v879_v61 = vpop.f32.mrb[5].mxu1  ;;  %948 = vmatmul.mubr.f32.vlgmr.msra.gmra.mrb[2].mxu0 %v409_v60 }
 0x38f   :  { %1234 = shalt.err (!%p1231_p8)
}
 0x390   :  { %s1235_s20 = scalar_lea.hbm %s1515_s5, 256 }
 0x391   :  { %p1236_p9 = scmp.ne.s32.totalorder %s1515_s5, %s1235_s20  ;;  %p1239_p10 = scmp.lt.u32.totalorder %s1235_s20, %s1515_s5 }
 0x393   :  { %p1241_p11 = pnand %p1239_p10, %p1236_p9 }
 0x395   :  { %1244 = shalt.err (!%p1241_p11)
}
 0x396   :  { %624 = dma.vmem_to_hbm [thread:$0]  %s619_s1, 256, %s1515_s5, [#allocation12], %s1279_s30, %s1279_s30, %s1280_s6  }
 0x397   :  { %s1287_s28 = smov [#allocation10]  }
 0x398   :  { %s606_s29 = sshll.u32 %s1287_s28, 4  ;;  %s607_s29 = int_to_ptr.vmem [resolvable:$true] %s606_s29 }
 0x399   :  { %s1245_s0 = scalar_lea.vmem %s607_s29, 256  ;;  %p1250_p13 = scmp.lt.s32.totalorder %s607_s29, %s607_s29 }
 0x39a   :  { %p1246_p12 = scmp.ne.s32.totalorder %s607_s29, %s1245_s0  ;;  %p1251_p0 = scmp.lt.s32.totalorder %s1245_s0, %s1245_s0 }
 0x39c   :  { %p1252_p1 = por %p1251_p0, %p1250_p13 }
 0x39e   :  { %p1253_p2 = pnand %p1252_p1, %p1246_p12 }
 0x461   :  { %v949_v62 = vpop.f32.mrb[2].mxu0 }
 0x462   :  { %1131 = vtanh.f32 %v949_v62  ;;  %v586_v63 = vpop.f32.mrb[3].mxu0 }
 0x463   :  { %1133 = vtanh.f32 %v586_v63 }
 0x46c   :  { %v1132_v2 = vpop.eup %1131 }
 0x46d   :  { %v1134_v3 = vpop.eup %1133  ;;  %598 = vst [vmem:[#allocation10 + $0x8] sm:$0xff] %v1132_v2 }
 0x46e   :  { %597 = vst [vmem:[#allocation10] sm:$0xff] %v1134_v3 }
 0x46f   :  { %1256 = shalt.err (!%p1253_p2)
}
 0x470   :  { %s1257_s7 = scalar_lea.hbm %s1514_s4, 256 }
 0x471   :  { %p1258_p3 = scmp.ne.s32.totalorder %s1514_s4, %s1257_s7  ;;  %p1261_p4 = scmp.lt.u32.totalorder %s1257_s7, %s1514_s4 }
 0x473   :  { %p1263_p5 = pnand %p1261_p4, %p1258_p3 }
 0x475   :  { %1266 = shalt.err (!%p1263_p5)
}
 0x476   :  { %612 = dma.vmem_to_hbm [thread:$0]  %s607_s29, 256, %s1514_s4, [#allocation4], %s1279_s30, %s1279_s30, %s1280_s6  }
 0x477   :  { %1273 = dma.done.wait [#allocation4], 256  }
 0x478   :  { %1274 = vsyncadd [#allocation4], 4294967040 }
 0x479   :  { %1275 = dma.done.wait [#allocation12], 256  }
 0x47a   :  { %1276 = vsyncadd [#allocation12], 4294967040 }
 0x47b   :  { %631 = vsyncpa [#allocation3], 1 }
 0x47c   :  { %632 = vsyncpa [#allocation6], 1 }
 0x47d   :  { %633 = vsyncpa [#allocation9], 1 }
 0x47e   :  { %634 = vsyncpa [#allocation4], 1 }
 0x47f   :  { %635 = vsyncpa [#allocation12], 1 }

</bundles_post_ra>
